<compile_context>
chip_gen: v7x
topology: tpu7x:2x2x1
jax: 0.10.0
libtpu: 0.0.40
codegen_flags: <defaults>
</compile_context>

<pallas_src>
import functools

import jax
import jax.numpy as jnp
from jax.experimental import pallas as pl
from jax.experimental.pallas import tpu as pltpu

MIB = 1024 * 1024


def _round_up(x, m):
    return ((x + m - 1) // m) * m


def _vmem_capacity_bytes():
    try:
        return int(pltpu.get_tpu_info().vmem_capacity_bytes)
    except Exception:
        return 64 * MIB  # conservative (v7x) fallback


def _vmem_need_bytes(tm, h, n_pad):
    resident = 2 * h * n_pad * 2          # single-buffered bf16 candidates (teacher + student)
    row_tiles = 2 * 2 * tm * h * 2        # double-buffered bf16 row tiles
    temps = 6 * tm * n_pad * 4            # live (TM, Npad) f32 intermediates
    accs = 2 * tm * 128 * 4               # (TM, 1) f32 accumulators (lane-padded)
    return resident + row_tiles + temps + accs


def _pick_row_tile(n_pad, h, vmem_cap):
    usable = max(vmem_cap - 16 * MIB, 16 * MIB)               # leave headroom for Mosaic scratch
    temp_cap = 16 * MIB if vmem_cap >= 96 * MIB else 10 * MIB  # tighter on v7x (64 MiB VMEM)
    for tm in (512, 256, 128, 64, 32, 16, 8):
        if tm > n_pad or n_pad % tm:
            continue
        if (_vmem_need_bytes(tm, h, n_pad) <= usable
                and 6 * tm * n_pad * 4 <= temp_cap):
            return tm
    # TODO(synk): for very large N where even TM=8 over-fills VMEM (e.g. H=768,
    # N >= ~16K on v7x), add a column-tile grid axis with flash-style online
    # softmax instead of keeping the full (H, N) candidate operands resident.
    return 8


def _prep_operands(emb, inv_temp, n_pad):
    """L2-normalize in f32 (CosineSimilarity), fold 1/temp into the candidate
    side, cast to bf16 and zero-pad rows/columns to the lane-aligned size."""
    n, h = emb.shape
    x = emb.astype(jnp.float32)
    x = x / jnp.linalg.norm(x, axis=-1, keepdims=True)
    rows = x.astype(jnp.bfloat16)                              # (N, H) query rows
    candT = (x * jnp.float32(inv_temp)).T.astype(jnp.bfloat16)  # (H, N) scaled candidates
    rows_p = jnp.zeros((n_pad, h), jnp.bfloat16).at[:n, :].set(rows)
    candT_p = jnp.zeros((h, n_pad), jnp.bfloat16).at[:, :n].set(candT)
    return rows_p, candT_p


def _listnet_kernel(t_rows_ref, s_rows_ref, t_candT_ref, s_candT_ref,
                    num_out_ref, den_out_ref, num_acc, den_acc, *, n_real):
    c = pl.program_id(0)                    # core-split index (parallel)
    i = pl.program_id(1)                    # row-tile step inside this split
    steps = pl.num_programs(1)
    tm = t_rows_ref.shape[0]
    n_pad = t_candT_ref.shape[1]

    @pl.when(i == 0)
    def _():
        num_acc[...] = jnp.zeros_like(num_acc)
        den_acc[...] = jnp.zeros_like(den_acc)

    # Fused Similarity(): cosine similarity on the MXU from bf16 operands with
    # f32 accumulation. The 1/temp scale is pre-folded into the candidates.
    t_sim = jnp.dot(t_rows_ref[...], t_candT_ref[...],
                    preferred_element_type=jnp.float32)
    s_sim = jnp.dot(s_rows_ref[...], s_candT_ref[...],
                    preferred_element_type=jnp.float32)

    # fill_diagonal_(-inf) + lane-padding columns, one shared mask.
    # TODO(synk): restrict the diag part of the mask to the (TM, TM) block at
    # columns [row0, row0+TM) if the VPU slot ever becomes binding.
    row0 = (c * steps + i) * tm
    rows = jax.lax.broadcasted_iota(jnp.int32, (tm, 1), 0) + row0
    cols = jax.lax.broadcasted_iota(jnp.int32, (tm, n_pad), 1)
    mask = cols == rows
    if n_pad != n_real:
        mask = jnp.logical_or(mask, cols >= n_real)

    # Large-finite sentinel instead of -inf: exp(sentinel - max) flushes to
    # exactly 0.0 in f32, so masked entries contribute 0*finite = 0 to (q*p)
    # and no third full-width select / NaN plumbing is needed.
    sentinel = jnp.float32(-1e30)
    t_m = jnp.where(mask, sentinel, t_sim)
    s_m = jnp.where(mask, sentinel, s_sim)

    # Teacher softmax kept un-normalized (q itself is never materialized).
    t_max = jnp.max(t_m, axis=-1, keepdims=True)
    t_exp = jnp.exp(t_m - t_max)                    # masked -> exactly 0
    t_sum = jnp.sum(t_exp, axis=-1, keepdims=True)

    # Student log-softmax.
    s_max = jnp.max(s_m, axis=-1, keepdims=True)
    s_sh = s_m - s_max
    s_lse = jnp.log(jnp.sum(jnp.exp(s_sh), axis=-1, keepdims=True))
    p = s_sh - s_lse                                # masked -> ~-1e30 (finite)

    # -(q*p).nansum() / q.nansum(): same approx reciprocal in num and den so
    # its error cancels in the final ratio.
    inv_t_sum = pl.reciprocal(t_sum, approx=True)   # EUP slot
    num_rows = jnp.sum(t_exp * p, axis=-1, keepdims=True) * inv_t_sum  # (TM, 1)
    den_rows = t_sum * inv_t_sum                                       # ~1.0/row

    if n_pad != n_real:                             # zero out padded query rows
        row_valid = (rows < n_real).astype(jnp.float32)
        num_rows = num_rows * row_valid
        den_rows = den_rows * row_valid

    num_acc[...] += num_rows
    den_acc[...] += den_rows

    # Reduce to scalar and store once per split (lane-dense (8,128) block).
    @pl.when(i == steps - 1)
    def _():
        num_out_ref[...] = jnp.broadcast_to(
            jnp.sum(num_acc[...], keepdims=True), num_out_ref.shape)
        den_out_ref[...] = jnp.broadcast_to(
            jnp.sum(den_acc[...], keepdims=True), den_out_ref.shape)


def listnet_loss(teacher_emb, student_emb, *, tau, gamma_, row_tile=None):
    """Fused Similarity + ListNet loss.

    teacher_emb, student_emb: (N, H) sentence embeddings (any float dtype).
    Returns the scalar gamma_ * ListNet loss, matching the PyTorch module.
    """
    n, h = teacher_emb.shape
    assert student_emb.shape == (n, h)
    assert n >= 2

    n_pad = _round_up(n, 128)
    t_rows, t_candT = _prep_operands(teacher_emb, 1.0 / (tau / 2.0), n_pad)
    s_rows, s_candT = _prep_operands(student_emb, 1.0 / tau, n_pad)

    vmem_cap = _vmem_capacity_bytes()
    tm = row_tile if row_tile is not None else _pick_row_tile(n_pad, h, vmem_cap)
    assert n_pad % tm == 0 and tm % 8 == 0

    # Split the row range across the two v7x TensorCores when the step count
    # allows it (on 1-TC chips the leading "parallel" axis runs sequentially).
    if (n_pad // tm) % 2 == 1 and tm >= 16:
        tm //= 2
    nc = 2 if (n_pad // tm) % 2 == 0 else 1
    steps_per_split = (n_pad // tm) // nc

    # Derived VMEM limit (extra resident copy allowed for the fallback path).
    need = _vmem_need_bytes(tm, h, n_pad) + 2 * h * n_pad * 2
    vmem_limit = int(min(vmem_cap - 8 * MIB, max(need + 16 * MIB, 32 * MIB)))

    kernel = functools.partial(_listnet_kernel, n_real=n)
    grid = (nc, steps_per_split)
    row_map = lambda c, i: (c * steps_per_split + i, 0)
    cand_map = lambda c, i: (0, 0)
    out_map = lambda c, i: (c, 0, 0)

    def build(single_buffer_residents):
        res_kwargs = dict(pipeline_mode=pl.Buffered(1)) if single_buffer_residents else {}
        return pl.pallas_call(
            kernel,
            out_shape=(jax.ShapeDtypeStruct((nc, 8, 128), jnp.float32),
                       jax.ShapeDtypeStruct((nc, 8, 128), jnp.float32)),
            grid=grid,
            in_specs=[
                pl.BlockSpec((tm, h), row_map),                   # teacher query rows
                pl.BlockSpec((tm, h), row_map),                   # student query rows
                pl.BlockSpec((h, n_pad), cand_map, **res_kwargs),  # teacher candidates^T (resident)
                pl.BlockSpec((h, n_pad), cand_map, **res_kwargs),  # student candidates^T (resident)
            ],
            out_specs=(pl.BlockSpec((1, 8, 128), out_map),
                       pl.BlockSpec((1, 8, 128), out_map)),
            scratch_shapes=[pltpu.VMEM((tm, 1), jnp.float32),   # running per-row sum of (q*p)
                            pltpu.VMEM((tm, 1), jnp.float32)],  # running per-row sum of q
            compiler_params=pltpu.CompilerParams(
                dimension_semantics=("parallel", "arbitrary"),
                vmem_limit_bytes=vmem_limit),
        )

    try:
        num_p, den_p = build(True)(t_rows, s_rows, t_candT, s_candT)
    except Exception:
        # pl.Buffered(1) not accepted on this build: fall back to default
        # double buffering of the resident candidate operands.
        num_p, den_p = build(False)(t_rows, s_rows, t_candT, s_candT)

    num_tot = jnp.sum(num_p[:, 0, 0])
    den_tot = jnp.sum(den_p[:, 0, 0])
    return jnp.float32(gamma_) * (-(num_tot / den_tot))


if __name__ == "__main__":
    # Module hyper-parameters (deterministic, in-script).
    tau = 0.05
    gamma_ = 0.10

    # Small deterministic inputs: N sentences, hidden dim H.
    N, H = 16, 32
    key = jax.random.PRNGKey(0)
    k_t, k_s = jax.random.split(key)
    teacher_emb = jax.random.normal(k_t, (N, H), dtype=jnp.float32)
    student_emb = jax.random.normal(k_s, (N, H), dtype=jnp.float32)

    loss = listnet_loss(teacher_emb, student_emb, tau=tau, gamma_=gamma_)
    jax.block_until_ready(loss)

    # Plain-JAX reference on the exact bf16 operands the kernel consumes.
    n_pad = _round_up(N, 128)
    t_rows, t_candT = _prep_operands(teacher_emb, 1.0 / (tau / 2.0), n_pad)
    s_rows, s_candT = _prep_operands(student_emb, 1.0 / tau, n_pad)
    t_sim = jnp.dot(t_rows[:N].astype(jnp.float32), t_candT[:, :N].astype(jnp.float32))
    s_sim = jnp.dot(s_rows[:N].astype(jnp.float32), s_candT[:, :N].astype(jnp.float32))

    diag = jnp.eye(N, dtype=bool)
    t_m = jnp.where(diag, -jnp.inf, t_sim)
    s_m = jnp.where(diag, -jnp.inf, s_sim)
    q_ref = jax.nn.softmax(t_m, axis=-1)
    p_ref = jax.nn.log_softmax(s_m, axis=-1)
    qp_ref = jnp.where(diag, 0.0, q_ref * p_ref)
    loss_ref = gamma_ * (-(jnp.sum(qp_ref) / jnp.sum(q_ref)))

    # Tolerance covers approx EUP reciprocal + bf16 matmul operands.
    assert jnp.allclose(loss, loss_ref, rtol=1e-3, atol=1e-6), (loss, loss_ref)

    print("KERNEL_OK")
</pallas_src>

<mosaic_0001>
module attributes {stable_mosaic.version = 11 : i64} {
  func.func @_listnet_kernel(%arg0: i32, %arg1: i32, %arg2: memref<64x32xbf16, #tpu.memory_space<vmem>>, %arg3: memref<64x32xbf16, #tpu.memory_space<vmem>>, %arg4: memref<32x128xbf16, #tpu.memory_space<vmem>>, %arg5: memref<32x128xbf16, #tpu.memory_space<vmem>>, %arg6: memref<1x8x128xf32, #tpu.memory_space<vmem>>, %arg7: memref<1x8x128xf32, #tpu.memory_space<vmem>>, %arg8: memref<64x1xf32, #tpu.memory_space<vmem>>, %arg9: memref<64x1xf32, #tpu.memory_space<vmem>>) attributes {dimension_semantics = [#tpu.dimension_semantics<parallel>, #tpu.dimension_semantics<arbitrary>], iteration_bounds = array<i64: 2, 1>, scalar_prefetch = 0 : i64, scratch_operands = 2 : i64, tpu.core_type = #tpu.core_type<tc>, window_params = [{transform_indices = @transform_0, window_bounds = array<i64: 64, 32>}, {transform_indices = @transform_1, window_bounds = array<i64: 64, 32>}, {pipeline_mode = #tpu.pipeline_mode<synchronous>, transform_indices = @transform_2, window_bounds = array<i64: 32, 128>}, {pipeline_mode = #tpu.pipeline_mode<synchronous>, transform_indices = @transform_3, window_bounds = array<i64: 32, 128>}, {transform_indices = @transform_4, window_bounds = array<i64: 1, 8, 128>}, {transform_indices = @transform_5, window_bounds = array<i64: 1, 8, 128>}]} {
    %c0_i32 = arith.constant 0 : i32
    %0 = arith.cmpi eq, %arg1, %c0_i32 : i32
    %1 = arith.extui %0 : i1 to i32
    %c0_i32_0 = arith.constant 0 : i32
    %2 = arith.cmpi ne, %1, %c0_i32_0 : i32
    scf.if %2 {
      %cst_27 = arith.constant 0.000000e+00 : f32
      %63 = vector.broadcast %cst_27 : f32 to vector<64x1xf32>
      %c0_28 = arith.constant 0 : index
      %c0_29 = arith.constant 0 : index
      %64 = vector.load %arg8[%c0_28, %c0_29] : memref<64x1xf32, #tpu.memory_space<vmem>>, vector<64x1xf32>
      tpu.vector_store %arg8[%c0_28, %c0_29], %63 {strides = array<i32>} : memref<64x1xf32, #tpu.memory_space<vmem>>, vector<64x1xf32>,
      %cst_30 = arith.constant 0.000000e+00 : f32
      %65 = vector.broadcast %cst_30 : f32 to vector<64x1xf32>
      %c0_31 = arith.constant 0 : index
      %c0_32 = arith.constant 0 : index
      %66 = vector.load %arg9[%c0_31, %c0_32] : memref<64x1xf32, #tpu.memory_space<vmem>>, vector<64x1xf32>
      tpu.vector_store %arg9[%c0_31, %c0_32], %65 {strides = array<i32>} : memref<64x1xf32, #tpu.memory_space<vmem>>, vector<64x1xf32>,
    } else {
    }
    %c0 = arith.constant 0 : index
    %c0_1 = arith.constant 0 : index
    %3 = vector.load %arg2[%c0, %c0_1] : memref<64x32xbf16, #tpu.memory_space<vmem>>, vector<64x32xbf16>
    %c0_2 = arith.constant 0 : index
    %c0_3 = arith.constant 0 : index
    %4 = vector.load %arg4[%c0_2, %c0_3] : memref<32x128xbf16, #tpu.memory_space<vmem>>, vector<32x128xbf16>
    %cst = arith.constant dense<0.000000e+00> : vector<64x128xf32>
    %5 = tpu.matmul %3, %4, %cst {dimension_numbers = #tpu.dot_dimension_numbers<[1], [0], [0], [1], [0, 0, 1, 1], [], []>} : vector<64x32xbf16>, vector<32x128xbf16>, vector<64x128xf32> -> vector<64x128xf32>
    %c0_4 = arith.constant 0 : index
    %c0_5 = arith.constant 0 : index
    %6 = vector.load %arg3[%c0_4, %c0_5] : memref<64x32xbf16, #tpu.memory_space<vmem>>, vector<64x32xbf16>
    %c0_6 = arith.constant 0 : index
    %c0_7 = arith.constant 0 : index
    %7 = vector.load %arg5[%c0_6, %c0_7] : memref<32x128xbf16, #tpu.memory_space<vmem>>, vector<32x128xbf16>
    %cst_8 = arith.constant dense<0.000000e+00> : vector<64x128xf32>
    %8 = tpu.matmul %6, %7, %cst_8 {dimension_numbers = #tpu.dot_dimension_numbers<[1], [0], [0], [1], [0, 0, 1, 1], [], []>} : vector<64x32xbf16>, vector<32x128xbf16>, vector<64x128xf32> -> vector<64x128xf32>
    %c1_i32 = arith.constant 1 : i32
    %9 = arith.muli %arg0, %c1_i32 : i32
    %10 = arith.addi %9, %arg1 : i32
    %c64_i32 = arith.constant 64 : i32
    %11 = arith.muli %10, %c64_i32 : i32
    %12 = tpu.iota {dimensions = array<i32: 0>} : vector<64x1xi32>
    %13 = vector.broadcast %11 : i32 to vector<64x1xi32>
    %14 = arith.addi %12, %13 : vector<64x1xi32>
    %15 = tpu.iota {dimensions = array<i32: 1>} : vector<64x128xi32>
    %16 = vector.broadcast %14 : vector<64x1xi32> to vector<64x128xi32>
    %17 = arith.cmpi eq, %15, %16 : vector<64x128xi32>
    %c16_i32 = arith.constant 16 : i32
    %18 = vector.broadcast %c16_i32 : i32 to vector<64x128xi32>
    %19 = arith.cmpi sge, %15, %18 : vector<64x128xi32>
    %20 = arith.ori %17, %19 : vector<64x128xi1>
    %cst_9 = arith.constant -1.000000e+30 : f32
    %21 = vector.broadcast %cst_9 : f32 to vector<64x128xf32>
    %22 = arith.select %20, %21, %5 : vector<64x128xi1>, vector<64x128xf32>
    %cst_10 = arith.constant -1.000000e+30 : f32
    %23 = vector.broadcast %cst_10 : f32 to vector<64x128xf32>
    %24 = arith.select %20, %23, %8 : vector<64x128xi1>, vector<64x128xf32>
    %cst_11 = arith.constant dense<0xFF800000> : vector<64xf32>
    %25 = vector.multi_reduction <maximumf>, %22, %cst_11 [1] : vector<64x128xf32> to vector<64xf32>
    %26 = vector.shape_cast %25 : vector<64xf32> to vector<64x1xf32>
    %27 = vector.broadcast %26 : vector<64x1xf32> to vector<64x128xf32>
    %28 = arith.subf %22, %27 : vector<64x128xf32>
    %29 = math.exp %28 : vector<64x128xf32>
    %cst_12 = arith.constant dense<0.000000e+00> : vector<64xf32>
    %30 = vector.multi_reduction <add>, %29, %cst_12 [1] : vector<64x128xf32> to vector<64xf32>
    %31 = vector.shape_cast %30 : vector<64xf32> to vector<64x1xf32>
    %cst_13 = arith.constant dense<0xFF800000> : vector<64xf32>
    %32 = vector.multi_reduction <maximumf>, %24, %cst_13 [1] : vector<64x128xf32> to vector<64xf32>
    %33 = vector.shape_cast %32 : vector<64xf32> to vector<64x1xf32>
    %34 = vector.broadcast %33 : vector<64x1xf32> to vector<64x128xf32>
    %35 = arith.subf %24, %34 : vector<64x128xf32>
    %36 = math.exp %35 : vector<64x128xf32>
    %cst_14 = arith.constant dense<0.000000e+00> : vector<64xf32>
    %37 = vector.multi_reduction <add>, %36, %cst_14 [1] : vector<64x128xf32> to vector<64xf32>
    %38 = vector.shape_cast %37 : vector<64xf32> to vector<64x1xf32>
    %39 = math.log %38 : vector<64x1xf32>
    %40 = vector.broadcast %39 : vector<64x1xf32> to vector<64x128xf32>
    %41 = arith.subf %35, %40 : vector<64x128xf32>
    %42 = tpu.reciprocal %31 {approx = true} : vector<64x1xf32> -> vector<64x1xf32>
    %43 = arith.mulf %29, %41 : vector<64x128xf32>
    %cst_15 = arith.constant dense<0.000000e+00> : vector<64xf32>
    %44 = vector.multi_reduction <add>, %43, %cst_15 [1] : vector<64x128xf32> to vector<64xf32>
    %45 = vector.shape_cast %44 : vector<64xf32> to vector<64x1xf32>
    %46 = arith.mulf %45, %42 : vector<64x1xf32>
    %47 = arith.mulf %31, %42 : vector<64x1xf32>
    %c16_i32_16 = arith.constant 16 : i32
    %48 = vector.broadcast %c16_i32_16 : i32 to vector<64x1xi32>
    %49 = arith.cmpi slt, %14, %48 : vector<64x1xi32>
    %50 = arith.extui %49 : vector<64x1xi1> to vector<64x1xi32>
    %51 = arith.sitofp %50 : vector<64x1xi32> to vector<64x1xf32>
    %52 = arith.mulf %46, %51 : vector<64x1xf32>
    %53 = arith.mulf %47, %51 : vector<64x1xf32>
    %c0_17 = arith.constant 0 : index
    %c0_18 = arith.constant 0 : index
    %54 = vector.load %arg8[%c0_17, %c0_18] : memref<64x1xf32, #tpu.memory_space<vmem>>, vector<64x1xf32>
    %55 = arith.addf %54, %52 : vector<64x1xf32>
    %c0_19 = arith.constant 0 : index
    %c0_20 = arith.constant 0 : index
    %56 = vector.load %arg8[%c0_19, %c0_20] : memref<64x1xf32, #tpu.memory_space<vmem>>, vector<64x1xf32>
    tpu.vector_store %arg8[%c0_19, %c0_20], %55 {strides = array<i32>} : memref<64x1xf32, #tpu.memory_space<vmem>>, vector<64x1xf32>,
    %c0_21 = arith.constant 0 : index
    %c0_22 = arith.constant 0 : index
    %57 = vector.load %arg9[%c0_21, %c0_22] : memref<64x1xf32, #tpu.memory_space<vmem>>, vector<64x1xf32>
    %58 = arith.addf %57, %53 : vector<64x1xf32>
    %c0_23 = arith.constant 0 : index
    %c0_24 = arith.constant 0 : index
    %59 = vector.load %arg9[%c0_23, %c0_24] : memref<64x1xf32, #tpu.memory_space<vmem>>, vector<64x1xf32>
    tpu.vector_store %arg9[%c0_23, %c0_24], %58 {strides = array<i32>} : memref<64x1xf32, #tpu.memory_space<vmem>>, vector<64x1xf32>,
    %c0_i32_25 = arith.constant 0 : i32
    %60 = arith.cmpi eq, %arg1, %c0_i32_25 : i32
    %61 = arith.extui %60 : i1 to i32
    %c0_i32_26 = arith.constant 0 : i32
    %62 = arith.cmpi ne, %61, %c0_i32_26 : i32
    scf.if %62 {
      %c0_27 = arith.constant 0 : index
      %c0_28 = arith.constant 0 : index
      %63 = vector.load %arg8[%c0_27, %c0_28] : memref<64x1xf32, #tpu.memory_space<vmem>>, vector<64x1xf32>
      %64 = vector.shape_cast %63 : vector<64x1xf32> to vector<1x64x1xf32>
      %cst_29 = arith.constant dense<0.000000e+00> : vector<1xf32>
      %65 = vector.multi_reduction <add>, %64, %cst_29 [1, 2] : vector<1x64x1xf32> to vector<1xf32>
      %66 = vector.shape_cast %65 : vector<1xf32> to vector<1x1x1xf32>
      %67 = vector.extract %66[0, 0, 0] : f32 from vector<1x1x1xf32>
      %68 = vector.broadcast %67 : f32 to vector<1x1xf32>
      %69 = vector.shape_cast %68 : vector<1x1xf32> to vector<1x1x1xf32>
      %70 = vector.broadcast %69 : vector<1x1x1xf32> to vector<1x8x128xf32>
      %c0_30 = arith.constant 0 : index
      %c0_31 = arith.constant 0 : index
      %c0_32 = arith.constant 0 : index
      %71 = vector.load %arg6[%c0_30, %c0_31, %c0_32] : memref<1x8x128xf32, #tpu.memory_space<vmem>>, vector<1x8x128xf32>
      tpu.vector_store %arg6[%c0_30, %c0_31, %c0_32], %70 {strides = array<i32>} : memref<1x8x128xf32, #tpu.memory_space<vmem>>, vector<1x8x128xf32>,
      %c0_33 = arith.constant 0 : index
      %c0_34 = arith.constant 0 : index
      %72 = vector.load %arg9[%c0_33, %c0_34] : memref<64x1xf32, #tpu.memory_space<vmem>>, vector<64x1xf32>
      %73 = vector.shape_cast %72 : vector<64x1xf32> to vector<1x64x1xf32>
      %cst_35 = arith.constant dense<0.000000e+00> : vector<1xf32>
      %74 = vector.multi_reduction <add>, %73, %cst_35 [1, 2] : vector<1x64x1xf32> to vector<1xf32>
      %75 = vector.shape_cast %74 : vector<1xf32> to vector<1x1x1xf32>
      %76 = vector.extract %75[0, 0, 0] : f32 from vector<1x1x1xf32>
      %77 = vector.broadcast %76 : f32 to vector<1x1xf32>
      %78 = vector.shape_cast %77 : vector<1x1xf32> to vector<1x1x1xf32>
      %79 = vector.broadcast %78 : vector<1x1x1xf32> to vector<1x8x128xf32>
      %c0_36 = arith.constant 0 : index
      %c0_37 = arith.constant 0 : index
      %c0_38 = arith.constant 0 : index
      %80 = vector.load %arg7[%c0_36, %c0_37, %c0_38] : memref<1x8x128xf32, #tpu.memory_space<vmem>>, vector<1x8x128xf32>
      tpu.vector_store %arg7[%c0_36, %c0_37, %c0_38], %79 {strides = array<i32>} : memref<1x8x128xf32, #tpu.memory_space<vmem>>, vector<1x8x128xf32>,
    } else {
    }
    return
  }
  func.func @transform_0(%arg0: i32, %arg1: i32) -> (i32, i32) {
    %c1_i32 = arith.constant 1 : i32
    %0 = arith.muli %arg0, %c1_i32 : i32
    %1 = arith.addi %0, %arg1 : i32
    %c0_i32 = arith.constant 0 : i32
    %c0_i32_0 = arith.constant 0 : i32
    return %1, %c0_i32 : i32, i32
  }
  func.func @transform_1(%arg0: i32, %arg1: i32) -> (i32, i32) {
    %c1_i32 = arith.constant 1 : i32
    %0 = arith.muli %arg0, %c1_i32 : i32
    %1 = arith.addi %0, %arg1 : i32
    %c0_i32 = arith.constant 0 : i32
    %c0_i32_0 = arith.constant 0 : i32
    return %1, %c0_i32 : i32, i32
  }
  func.func @transform_2(%arg0: i32, %arg1: i32) -> (i32, i32) {
    %c0_i32 = arith.constant 0 : i32
    %c0_i32_0 = arith.constant 0 : i32
    %c0_i32_1 = arith.constant 0 : i32
    return %c0_i32, %c0_i32_0 : i32, i32
  }
  func.func @transform_3(%arg0: i32, %arg1: i32) -> (i32, i32) {
    %c0_i32 = arith.constant 0 : i32
    %c0_i32_0 = arith.constant 0 : i32
    %c0_i32_1 = arith.constant 0 : i32
    return %c0_i32, %c0_i32_0 : i32, i32
  }
  func.func @transform_4(%arg0: i32, %arg1: i32) -> (i32, i32, i32) {
    %c0_i32 = arith.constant 0 : i32
    %c0_i32_0 = arith.constant 0 : i32
    %c0_i32_1 = arith.constant 0 : i32
    return %arg0, %c0_i32, %c0_i32_0 : i32, i32, i32
  }
  func.func @transform_5(%arg0: i32, %arg1: i32) -> (i32, i32, i32) {
    %c0_i32 = arith.constant 0 : i32
    %c0_i32_0 = arith.constant 0 : i32
    %c0_i32_1 = arith.constant 0 : i32
    return %arg0, %c0_i32, %c0_i32_0 : i32, i32, i32
  }
}

module attributes {stable_mosaic.version = 11 : i64} {
  func.func @_listnet_kernel(%arg0: i32, %arg1: i32, %arg2: memref<64x32xbf16, #tpu.memory_space<vmem>>, %arg3: memref<64x32xbf16, #tpu.memory_space<vmem>>, %arg4: memref<32x128xbf16, #tpu.memory_space<vmem>>, %arg5: memref<32x128xbf16, #tpu.memory_space<vmem>>, %arg6: memref<1x8x128xf32, #tpu.memory_space<vmem>>, %arg7: memref<1x8x128xf32, #tpu.memory_space<vmem>>, %arg8: memref<64x1xf32, #tpu.memory_space<vmem>>, %arg9: memref<64x1xf32, #tpu.memory_space<vmem>>) attributes {dimension_semantics = [#tpu.dimension_semantics<parallel>, #tpu.dimension_semantics<arbitrary>], iteration_bounds = array<i64: 2, 1>, scalar_prefetch = 0 : i64, scratch_operands = 2 : i64, tpu.core_type = #tpu.core_type<tc>, window_params = [{transform_indices = @transform_0, window_bounds = array<i64: 64, 32>}, {transform_indices = @transform_1, window_bounds = array<i64: 64, 32>}, {pipeline_mode = #tpu.pipeline_mode<synchronous>, transform_indices = @transform_2, window_bounds = array<i64: 32, 128>}, {pipeline_mode = #tpu.pipeline_mode<synchronous>, transform_indices = @transform_3, window_bounds = array<i64: 32, 128>}, {transform_indices = @transform_4, window_bounds = array<i64: 1, 8, 128>}, {transform_indices = @transform_5, window_bounds = array<i64: 1, 8, 128>}]} {
    %c0_i32 = arith.constant 0 : i32
    %0 = arith.cmpi eq, %arg1, %c0_i32 : i32
    %1 = arith.extui %0 : i1 to i32
    %c0_i32_0 = arith.constant 0 : i32
    %2 = arith.cmpi ne, %1, %c0_i32_0 : i32
    scf.if %2 {
      %cst_27 = arith.constant 0.000000e+00 : f32
      %63 = vector.broadcast %cst_27 : f32 to vector<64x1xf32>
      %c0_28 = arith.constant 0 : index
      %c0_29 = arith.constant 0 : index
      %64 = vector.load %arg8[%c0_28, %c0_29] : memref<64x1xf32, #tpu.memory_space<vmem>>, vector<64x1xf32>
      tpu.vector_store %arg8[%c0_28, %c0_29], %63 {strides = array<i32>} : memref<64x1xf32, #tpu.memory_space<vmem>>, vector<64x1xf32>,
      %cst_30 = arith.constant 0.000000e+00 : f32
      %65 = vector.broadcast %cst_30 : f32 to vector<64x1xf32>
      %c0_31 = arith.constant 0 : index
      %c0_32 = arith.constant 0 : index
      %66 = vector.load %arg9[%c0_31, %c0_32] : memref<64x1xf32, #tpu.memory_space<vmem>>, vector<64x1xf32>
      tpu.vector_store %arg9[%c0_31, %c0_32], %65 {strides = array<i32>} : memref<64x1xf32, #tpu.memory_space<vmem>>, vector<64x1xf32>,
    } else {
    }
    %c0 = arith.constant 0 : index
    %c0_1 = arith.constant 0 : index
    %3 = vector.load %arg2[%c0, %c0_1] : memref<64x32xbf16, #tpu.memory_space<vmem>>, vector<64x32xbf16>
    %c0_2 = arith.constant 0 : index
    %c0_3 = arith.constant 0 : index
    %4 = vector.load %arg4[%c0_2, %c0_3] : memref<32x128xbf16, #tpu.memory_space<vmem>>, vector<32x128xbf16>
    %cst = arith.constant dense<0.000000e+00> : vector<64x128xf32>
    %5 = tpu.matmul %3, %4, %cst {dimension_numbers = #tpu.dot_dimension_numbers<[1], [0], [0], [1], [0, 0, 1, 1], [], []>} : vector<64x32xbf16>, vector<32x128xbf16>, vector<64x128xf32> -> vector<64x128xf32>
    %c0_4 = arith.constant 0 : index
    %c0_5 = arith.constant 0 : index
    %6 = vector.load %arg3[%c0_4, %c0_5] : memref<64x32xbf16, #tpu.memory_space<vmem>>, vector<64x32xbf16>
    %c0_6 = arith.constant 0 : index
    %c0_7 = arith.constant 0 : index
    %7 = vector.load %arg5[%c0_6, %c0_7] : memref<32x128xbf16, #tpu.memory_space<vmem>>, vector<32x128xbf16>
    %cst_8 = arith.constant dense<0.000000e+00> : vector<64x128xf32>
    %8 = tpu.matmul %6, %7, %cst_8 {dimension_numbers = #tpu.dot_dimension_numbers<[1], [0], [0], [1], [0, 0, 1, 1], [], []>} : vector<64x32xbf16>, vector<32x128xbf16>, vector<64x128xf32> -> vector<64x128xf32>
    %c1_i32 = arith.constant 1 : i32
    %9 = arith.muli %arg0, %c1_i32 : i32
    %10 = arith.addi %9, %arg1 : i32
    %c64_i32 = arith.constant 64 : i32
    %11 = arith.muli %10, %c64_i32 : i32
    %12 = tpu.iota {dimensions = array<i32: 0>} : vector<64x1xi32>
    %13 = vector.broadcast %11 : i32 to vector<64x1xi32>
    %14 = arith.addi %12, %13 : vector<64x1xi32>
    %15 = tpu.iota {dimensions = array<i32: 1>} : vector<64x128xi32>
    %16 = vector.broadcast %14 : vector<64x1xi32> to vector<64x128xi32>
    %17 = arith.cmpi eq, %15, %16 : vector<64x128xi32>
    %c16_i32 = arith.constant 16 : i32
    %18 = vector.broadcast %c16_i32 : i32 to vector<64x128xi32>
    %19 = arith.cmpi sge, %15, %18 : vector<64x128xi32>
    %20 = arith.ori %17, %19 : vector<64x128xi1>
    %cst_9 = arith.constant -1.000000e+30 : f32
    %21 = vector.broadcast %cst_9 : f32 to vector<64x128xf32>
    %22 = arith.select %20, %21, %5 : vector<64x128xi1>, vector<64x128xf32>
    %cst_10 = arith.constant -1.000000e+30 : f32
    %23 = vector.broadcast %cst_10 : f32 to vector<64x128xf32>
    %24 = arith.select %20, %23, %8 : vector<64x128xi1>, vector<64x128xf32>
    %cst_11 = arith.constant dense<0xFF800000> : vector<64xf32>
    %25 = vector.multi_reduction <maximumf>, %22, %cst_11 [1] : vector<64x128xf32> to vector<64xf32>
    %26 = vector.shape_cast %25 : vector<64xf32> to vector<64x1xf32>
    %27 = vector.broadcast %26 : vector<64x1xf32> to vector<64x128xf32>
    %28 = arith.subf %22, %27 : vector<64x128xf32>
    %29 = math.exp %28 : vector<64x128xf32>
    %cst_12 = arith.constant dense<0.000000e+00> : vector<64xf32>
    %30 = vector.multi_reduction <add>, %29, %cst_12 [1] : vector<64x128xf32> to vector<64xf32>
    %31 = vector.shape_cast %30 : vector<64xf32> to vector<64x1xf32>
    %cst_13 = arith.constant dense<0xFF800000> : vector<64xf32>
    %32 = vector.multi_reduction <maximumf>, %24, %cst_13 [1] : vector<64x128xf32> to vector<64xf32>
    %33 = vector.shape_cast %32 : vector<64xf32> to vector<64x1xf32>
    %34 = vector.broadcast %33 : vector<64x1xf32> to vector<64x128xf32>
    %35 = arith.subf %24, %34 : vector<64x128xf32>
    %36 = math.exp %35 : vector<64x128xf32>
    %cst_14 = arith.constant dense<0.000000e+00> : vector<64xf32>
    %37 = vector.multi_reduction <add>, %36, %cst_14 [1] : vector<64x128xf32> to vector<64xf32>
    %38 = vector.shape_cast %37 : vector<64xf32> to vector<64x1xf32>
    %39 = math.log %38 : vector<64x1xf32>
    %40 = vector.broadcast %39 : vector<64x1xf32> to vector<64x128xf32>
    %41 = arith.subf %35, %40 : vector<64x128xf32>
    %42 = tpu.reciprocal %31 {approx = true} : vector<64x1xf32> -> vector<64x1xf32>
    %43 = arith.mulf %29, %41 : vector<64x128xf32>
    %cst_15 = arith.constant dense<0.000000e+00> : vector<64xf32>
    %44 = vector.multi_reduction <add>, %43, %cst_15 [1] : vector<64x128xf32> to vector<64xf32>
    %45 = vector.shape_cast %44 : vector<64xf32> to vector<64x1xf32>
    %46 = arith.mulf %45, %42 : vector<64x1xf32>
    %47 = arith.mulf %31, %42 : vector<64x1xf32>
    %c16_i32_16 = arith.constant 16 : i32
    %48 = vector.broadcast %c16_i32_16 : i32 to vector<64x1xi32>
    %49 = arith.cmpi slt, %14, %48 : vector<64x1xi32>
    %50 = arith.extui %49 : vector<64x1xi1> to vector<64x1xi32>
    %51 = arith.sitofp %50 : vector<64x1xi32> to vector<64x1xf32>
    %52 = arith.mulf %46, %51 : vector<64x1xf32>
    %53 = arith.mulf %47, %51 : vector<64x1xf32>
    %c0_17 = arith.constant 0 : index
    %c0_18 = arith.constant 0 : index
    %54 = vector.load %arg8[%c0_17, %c0_18] : memref<64x1xf32, #tpu.memory_space<vmem>>, vector<64x1xf32>
    %55 = arith.addf %54, %52 : vector<64x1xf32>
    %c0_19 = arith.constant 0 : index
    %c0_20 = arith.constant 0 : index
    %56 = vector.load %arg8[%c0_19, %c0_20] : memref<64x1xf32, #tpu.memory_space<vmem>>, vector<64x1xf32>
    tpu.vector_store %arg8[%c0_19, %c0_20], %55 {strides = array<i32>} : memref<64x1xf32, #tpu.memory_space<vmem>>, vector<64x1xf32>,
    %c0_21 = arith.constant 0 : index
    %c0_22 = arith.constant 0 : index
    %57 = vector.load %arg9[%c0_21, %c0_22] : memref<64x1xf32, #tpu.memory_space<vmem>>, vector<64x1xf32>
    %58 = arith.addf %57, %53 : vector<64x1xf32>
    %c0_23 = arith.constant 0 : index
    %c0_24 = arith.constant 0 : index
    %59 = vector.load %arg9[%c0_23, %c0_24] : memref<64x1xf32, #tpu.memory_space<vmem>>, vector<64x1xf32>
    tpu.vector_store %arg9[%c0_23, %c0_24], %58 {strides = array<i32>} : memref<64x1xf32, #tpu.memory_space<vmem>>, vector<64x1xf32>,
    %c0_i32_25 = arith.constant 0 : i32
    %60 = arith.cmpi eq, %arg1, %c0_i32_25 : i32
    %61 = arith.extui %60 : i1 to i32
    %c0_i32_26 = arith.constant 0 : i32
    %62 = arith.cmpi ne, %61, %c0_i32_26 : i32
    scf.if %62 {
      %c0_27 = arith.constant 0 : index
      %c0_28 = arith.constant 0 : index
      %63 = vector.load %arg8[%c0_27, %c0_28] : memref<64x1xf32, #tpu.memory_space<vmem>>, vector<64x1xf32>
      %64 = vector.shape_cast %63 : vector<64x1xf32> to vector<1x64x1xf32>
      %cst_29 = arith.constant dense<0.000000e+00> : vector<1xf32>
      %65 = vector.multi_reduction <add>, %64, %cst_29 [1, 2] : vector<1x64x1xf32> to vector<1xf32>
      %66 = vector.shape_cast %65 : vector<1xf32> to vector<1x1x1xf32>
      %67 = vector.extract %66[0, 0, 0] : f32 from vector<1x1x1xf32>
      %68 = vector.broadcast %67 : f32 to vector<1x1xf32>
      %69 = vector.shape_cast %68 : vector<1x1xf32> to vector<1x1x1xf32>
      %70 = vector.broadcast %69 : vector<1x1x1xf32> to vector<1x8x128xf32>
      %c0_30 = arith.constant 0 : index
      %c0_31 = arith.constant 0 : index
      %c0_32 = arith.constant 0 : index
      %71 = vector.load %arg6[%c0_30, %c0_31, %c0_32] : memref<1x8x128xf32, #tpu.memory_space<vmem>>, vector<1x8x128xf32>
      tpu.vector_store %arg6[%c0_30, %c0_31, %c0_32], %70 {strides = array<i32>} : memref<1x8x128xf32, #tpu.memory_space<vmem>>, vector<1x8x128xf32>,
      %c0_33 = arith.constant 0 : index
      %c0_34 = arith.constant 0 : index
      %72 = vector.load %arg9[%c0_33, %c0_34] : memref<64x1xf32, #tpu.memory_space<vmem>>, vector<64x1xf32>
      %73 = vector.shape_cast %72 : vector<64x1xf32> to vector<1x64x1xf32>
      %cst_35 = arith.constant dense<0.000000e+00> : vector<1xf32>
      %74 = vector.multi_reduction <add>, %73, %cst_35 [1, 2] : vector<1x64x1xf32> to vector<1xf32>
      %75 = vector.shape_cast %74 : vector<1xf32> to vector<1x1x1xf32>
      %76 = vector.extract %75[0, 0, 0] : f32 from vector<1x1x1xf32>
      %77 = vector.broadcast %76 : f32 to vector<1x1xf32>
      %78 = vector.shape_cast %77 : vector<1x1xf32> to vector<1x1x1xf32>
      %79 = vector.broadcast %78 : vector<1x1x1xf32> to vector<1x8x128xf32>
      %c0_36 = arith.constant 0 : index
      %c0_37 = arith.constant 0 : index
      %c0_38 = arith.constant 0 : index
      %80 = vector.load %arg7[%c0_36, %c0_37, %c0_38] : memref<1x8x128xf32, #tpu.memory_space<vmem>>, vector<1x8x128xf32>
      tpu.vector_store %arg7[%c0_36, %c0_37, %c0_38], %79 {strides = array<i32>} : memref<1x8x128xf32, #tpu.memory_space<vmem>>, vector<1x8x128xf32>,
    } else {
    }
    return
  }
  func.func @transform_0(%arg0: i32, %arg1: i32) -> (i32, i32) {
    %c1_i32 = arith.constant 1 : i32
    %0 = arith.muli %arg0, %c1_i32 : i32
    %1 = arith.addi %0, %arg1 : i32
    %c0_i32 = arith.constant 0 : i32
    %c0_i32_0 = arith.constant 0 : i32
    return %1, %c0_i32 : i32, i32
  }
  func.func @transform_1(%arg0: i32, %arg1: i32) -> (i32, i32) {
    %c1_i32 = arith.constant 1 : i32
    %0 = arith.muli %arg0, %c1_i32 : i32
    %1 = arith.addi %0, %arg1 : i32
    %c0_i32 = arith.constant 0 : i32
    %c0_i32_0 = arith.constant 0 : i32
    return %1, %c0_i32 : i32, i32
  }
  func.func @transform_2(%arg0: i32, %arg1: i32) -> (i32, i32) {
    %c0_i32 = arith.constant 0 : i32
    %c0_i32_0 = arith.constant 0 : i32
    %c0_i32_1 = arith.constant 0 : i32
    return %c0_i32, %c0_i32_0 : i32, i32
  }
  func.func @transform_3(%arg0: i32, %arg1: i32) -> (i32, i32) {
    %c0_i32 = arith.constant 0 : i32
    %c0_i32_0 = arith.constant 0 : i32
    %c0_i32_1 = arith.constant 0 : i32
    return %c0_i32, %c0_i32_0 : i32, i32
  }
  func.func @transform_4(%arg0: i32, %arg1: i32) -> (i32, i32, i32) {
    %c0_i32 = arith.constant 0 : i32
    %c0_i32_0 = arith.constant 0 : i32
    %c0_i32_1 = arith.constant 0 : i32
    return %arg0, %c0_i32, %c0_i32_0 : i32, i32, i32
  }
  func.func @transform_5(%arg0: i32, %arg1: i32) -> (i32, i32, i32) {
    %c0_i32 = arith.constant 0 : i32
    %c0_i32_0 = arith.constant 0 : i32
    %c0_i32_1 = arith.constant 0 : i32
    return %arg0, %c0_i32, %c0_i32_0 : i32, i32, i32
  }
}

</mosaic_0001>

<bundles_post_ra>
// kernel: tpu_custom_call.1
= control target key start
LH: loop header
LB: loop body
LE: loop exit
PB: predicated region body
PF: predicated region fallthrough
CT: control target
= control target key end

     0   :  { %s1907_s0 = inlined_call_operand.vmem [shape: bf16[128,32], index: 0, kind: input, shape index: {}]   ;;  %s1908_s1 = inlined_call_operand.vmem [shape: bf16[128,32], index: 1, kind: input, shape index: {}]   ;;  %s1909_s2 = inlined_call_operand.vmem [shape: bf16[32,128], index: 2, kind: input, shape index: {}]   ;;  %s1910_s3 = inlined_call_operand.vmem [shape: bf16[32,128], index: 3, kind: input, shape index: {}]   ;;  %s1911_s4 = inlined_call_operand.hbm [shape: f32[2,8,128], index: 4, kind: output, shape index: {0}]   ;;  %s1912_s5 = inlined_call_operand.hbm [shape: f32[2,8,128], index: 5, kind: output, shape index: {1}]  }
   0x1   :  { %1913 = sst [smem:[#allocation10_spill]] %s1907_s0 }
   0x2   :  { %11 = vsyncpa [#allocation5], 0 }
   0x3   :  { %13 = vsyncpa [#allocation5 + $0x1], 0 }
   0x4   :  { %14 = vsyncpa [#allocation7], 0 }
   0x5   :  { %16 = vsyncpa [#allocation7 + $0x1], 0  ;;  %s1459_s18 = smov 0   ;;  %s1461_s19 = smov 0  }
   0x6   :  { %s1463_s20 = smov 0   ;;  %s1465_s21 = smov 0  }
   0x7   :  { %s1467_s22 = smov 0   ;;  %s1469_s23 = smov 0  }
   0x8 LB: > { %s1091_s24 = sadd.s32 4294967295, %s1424_s23   ;;  %s1092_s25 = sadd.s32 4294967294, %s1424_s23   ;;  %s1424_s23 = sphi %s1469_s23, %s22_s23   ;;  %s1420_s22 = sphi %s1467_s22, %s1937_s22   ;;  %s1416_s21 = sphi %s1465_s21, %s1936_s21   ;;  %s1412_s20 = sphi %s1463_s20, %s1935_s20   ;;  %s1408_s19 = sphi %s1461_s19, %s1934_s19   ;;  %s1404_s18 = sphi %s1459_s18, %s1933_s18  }
   0x9   : > { %s34_s26 = sadd.s32 1, %s1420_s22  ;;  %s139_s27 = sadd.s32 1, %s1412_s20 }
   0xa   : > { %p36_p0 = scmp.ge.s32.totalorder %s34_s26, 2  ;;  %p149_p1 = scmp.ne.s32.totalorder %s1412_s20, %s1408_s19 }
   0xb   : > { %p150_p2 = scmp.eq.s32.totalorder %s1091_s24, 1  ;;  %p155_p3 = scmp.ne.s32.totalorder %s1408_s19, %s1404_s18 }
   0xc   : > { %s1939_s26 = smov (%p36_p0, %s34_s26), 0  ;;  %p156_p5 = scmp.eq.s32.totalorder %s1092_s25, 1 }
   0xd   : > { %p1499_p4 = por %p150_p2, %p149_p1  ;;  %s136_s29 = ssub.s32 %s1420_s22, %s1939_s26 }
   0xe   : > { %p1095_p6 = scmp.ge.s32.totalorder %s1424_s23, 1  ;;  %p137_p7 = scmp.eq.s32.totalorder %s136_s29, 0 }
   0xf   : > { %p1506_p8 = por %p156_p5, %p155_p3  ;;  %p228_p9 = scmp.lt.s32.totalorder %s1424_s23, 3 }
  0x10   : > { %s1512_s6 = scalar_select %p137_p7, %s1412_s20, %s139_s27  }
  0x11   : > { %p229_p10 = pnand %p1095_p6, %p228_p9 }
  0x12   : > { %v1238_v0 = vld [vmem:[%s1910_s3] sm:$0xff] (!%p229_p10)   ;;  %s1098_s9 = sshll.u32 (!%p229_p10), %s1416_s21, 3  ;;  %v1239_v1 = vld [vmem:[%s1910_s3 + $0x8] sm:$0xff] (!%p229_p10)   ;;  %vm350_vm0 = vcmask (!%p229_p10), 261120   ;;  %s1916_s0 = sld [smem:[#allocation10_spill]] (!%p229_p10)  ;;  %v551_v12 = vlaneseq (!%p229_p10) }
  0x13   : > { %232 = sbr.rel (%p229_p10) target bundleno = 985 (0x3d9), region = 36  ;;  %p270_p11 = scmp.lt.s32.totalorder (!%p229_p10), %s1098_s9, 15  ;;  %1161 = vmatprep.subr.bf16.mxu1 (!%p229_p10), %v1238_v0  ;;  %v1243_v2 = vld [vmem:[%s1909_s2] sm:$0xff] (!%p229_p10)   ;;  %v1245_v3 = vld [vmem:[%s1909_s2 + $0x8] sm:$0xff] (!%p229_p10)  }
  0x14   : > { %1162 = vmatpush3.bf16.msra.mxu1 (!%p229_p10), %v1238_v0  ;;  %1149 = vmatprep.subr.bf16.mxu0 (!%p229_p10), %v1243_v2  ;;  %v552_v13 = vshrl.u32 (!%p229_p10), %v551_v12, 7  ;;  %s1122_s8 = sshll.u32 (!%p229_p10), %s1416_s21, 6  ;;  %v570_v17 = vand.u32 (!%p229_p10), 127, %v551_v12  ;;  %s1133_s15 = sshll.u32 (!%p229_p10), %s1416_s21, 7 }
  0x15   : > { %1163 = vmatprep.subr.bf16.mxu1 (!%p229_p10), %v1239_v1  ;;  %1150 = vmatpush3.bf16.msra.mxu0 (!%p229_p10), %v1243_v2  ;;  %v560_v15 = vstv (!%p229_p10), %s1122_s8  ;;  %s1832_s24 = scalar_lea.hbm (!%p229_p10), %s1911_s4, %s1133_s15  ;;  %s1839_s8 = scalar_lea.hbm (!%p229_p10), %s1912_s5, %s1133_s15 }
  0x16   : > { %1151 = vmatprep.subr.bf16.mxu0 (!%p229_p10), %v1245_v3  ;;  %v554_v14 = vadd.s32 (!%p229_p10), 16, %v552_v13  ;;  %v555_v18 = vadd.s32 (!%p229_p10), 24, %v552_v13  ;;  %v1544_v19 = vadd.s32 (!%p229_p10), %v560_v15, %v552_v13  ;;  %v553_v20 = vadd.s32 (!%p229_p10), 8, %v552_v13 }
  0x17   : > { %vm579_vm2 = vcmp.ge.s32.totalorder (!%p229_p10), %v570_v17, 16  ;;  %v556_v23 = vadd.s32 (!%p229_p10), 32, %v552_v13  ;;  %v557_v24 = vadd.s32 (!%p229_p10), 40, %v552_v13  ;;  %v558_v26 = vadd.s32 (!%p229_p10), 48, %v552_v13 }
  0x18   : > { %1164 = vmatpush3.bf16.msra.mxu1 (!%p229_p10), %v1239_v1  ;;  %v1542_v16 = vadd.s32 (!%p229_p10), %v560_v15, %v554_v14  ;;  %v1547_v21 = vadd.s32 (!%p229_p10), %v560_v15, %v555_v18  ;;  %vm571_vm3 = vcmp.eq.s32.totalorder (!%p229_p10), %v570_v17, %v1544_v19  ;;  %v1550_v22 = vadd.s32 (!%p229_p10), %v560_v15, %v553_v20 }
  0x19   : > { %1152 = vmatpush3.bf16.msra.mxu0 (!%p229_p10), %v1245_v3  ;;  %vm1558_vm5 = vmor (!%p229_p10), %vm571_vm3, %vm579_vm2  ;;  %v1564_v29 = vadd.s32 (!%p229_p10), %v560_v15, %v556_v23  ;;  %v559_v30 = vadd.s32 (!%p229_p10), 56, %v552_v13  ;;  %v1568_v33 = vadd.s32 (!%p229_p10), %v560_v15, %v557_v24  ;;  %v1577_v37 = vadd.s32 (!%p229_p10), %v560_v15, %v558_v26 }
  0x1a   : > { %s1941_s9 = smov (!%p270_p11, %s1098_s9), 15  ;;  %vm573_vm1 = vcmp.eq.s32.totalorder %v570_v17, %v1542_v16  ;;  %vm574_vm6 = vcmp.eq.s32.totalorder %v570_v17, %v1547_v21  ;;  %vm572_vm7 = vcmp.eq.s32.totalorder %v570_v17, %v1550_v22  ;;  %vm788_vm3 = vcmp.lt.s32.totalorder %v1544_v19, 16 }
  0x1b   : > { %s1099_s16 = sshll.u32 %s1941_s9, 2  ;;  %vm1553_vm4 = vmor %vm573_vm1, %vm579_vm2  ;;  %vm575_vm10 = vcmp.eq.s32.totalorder %v570_v17, %v1564_v29  ;;  %v1585_v41 = vadd.s32 %v560_v15, %v559_v30  ;;  %vm576_vm11 = vcmp.eq.s32.totalorder %v570_v17, %v1568_v33  ;;  %vm577_vm12 = vcmp.eq.s32.totalorder %v570_v17, %v1577_v37  ;;  %s1823_s9 = sand.u32 1, %s1408_s19  }
  0x1c   : > { %s281_s25 = scalar_lea.vmem %s1908_s1, %s1099_s16  ;;  %s273_s7 = scalar_lea.vmem %s1916_s0, %s1099_s16  ;;  %vm1573_vm8 = vmor %vm574_vm6, %vm579_vm2  ;;  %vm792_vm6 = vcmp.lt.s32.totalorder %v1564_v29, 16 }
  0x1d   : > { %v1240_v4 = vld [vmem:[%s281_s25] sm:$0xff]   ;;  %v1241_v5 = vld [vmem:[%s281_s25 + $0x8] sm:$0xff]   ;;  %v1242_v6 = vld [vmem:[%s281_s25 + $0x10] sm:$0xff]   ;;  %vm578_vm15 = vcmp.eq.s32.totalorder %v570_v17, %v1585_v41  ;;  %s1096_s10 = sshll.u32 %s1823_s9, 3  ;;  %s949_s21 = scalar_lea.sflag [#allocation5], %s1823_s9 }
  0x1e   : > { %1165 = vmatprep.mubr.msk.bf16.mxu1 %vm350_vm0, %v1240_v4  ;;  %v1246_v7 = vld [vmem:[%s273_s7] sm:$0xff]   ;;  %v1247_v8 = vld [vmem:[%s273_s7 + $0x8] sm:$0xff]   ;;  %v1248_v9 = vld [vmem:[%s273_s7 + $0x10] sm:$0xff]   ;;  %s267_s11 = scalar_lea.vmem [#allocation6], %s1096_s10  ;;  %s260_s13 = scalar_lea.vmem [#allocation4], %s1096_s10 }
  0x1f   : > { %1166 = vmatmul.mubr.msk.bf16.vlgmr.msra.gmra.mrb[0].mxu1 %vm350_vm0, %v1241_v5  ;;  %1153 = vmatprep.mubr.msk.bf16.mxu0 %vm350_vm0, %v1246_v7  ;;  %v1244_v10 = vld [vmem:[%s281_s25 + $0x18] sm:$0xff]   ;;  %vm1580_vm9 = vmor %vm572_vm7, %vm579_vm2  ;;  %vm791_vm7 = vcmp.lt.s32.totalorder %v1547_v21, 16  ;;  %s980_s12 = sshll.u32 %s267_s11, 4  ;;  %s967_s14 = sshll.u32 %s260_s13, 4  ;;  %s1827_s12 = int_to_ptr.vmem [resolvable:$true] %s980_s12  ;;  %s1834_s14 = int_to_ptr.vmem [resolvable:$true] %s967_s14 }
  0x20   : > { %1169 = vmatprep.mubr.msk.bf16.mxu1 %vm350_vm0, %v1242_v6  ;;  %1154 = vmatmul.mubr.msk.bf16.vlgmr.msra.gmra.mrb[0].mxu0 %vm350_vm0, %v1247_v8  ;;  %v1249_v11 = vld [vmem:[%s273_s7 + $0x18] sm:$0xff]   ;;  %vm1594_vm13 = vmor %vm575_vm10, %vm579_vm2  ;;  %vm793_vm10 = vcmp.lt.s32.totalorder %v1568_v33, 16  ;;  %s1314_s10 = scalar_lea.vmem %s1834_s14, 128  ;;  %s1427_s16 = smov [#allocation4]  }
  0x21   : > { %1157 = vmatprep.mubr.msk.bf16.mxu0 %vm350_vm0, %v1248_v9  ;;  %vm1599_vm14 = vmor %vm576_vm11, %vm579_vm2  ;;  %p1315_p12 = scmp.ne.s32.totalorder %s1834_s14, %s1314_s10  ;;  %s1318_s17 = sshll.u32 %s1427_s16, 4  ;;  %s1319_s17 = int_to_ptr.vmem [resolvable:$false] %s1318_s17 }
  0x22   : > { %vm1612_vm1 = vmor %vm578_vm15, %vm579_vm2  ;;  %s1320_s0 = scalar_lea.vmem %s1319_s17, 256  ;;  %p1321_p1 = scmp.lt.s32.totalorder %s1834_s14, %s1319_s17 }
  0x23   : > { %p1316_p13 = pnand %p1315_p12, %p1499_p4  ;;  %p1322_p2 = scmp.lt.s32.totalorder %s1320_s0, %s1314_s10 }
  0x25   : > { %p1317_p0 = pneg %p1316_p13  ;;  %p1323_p3 = por %p1322_p2, %p1321_p1 }
  0x27   : > { %1170 = vmatmul.mubr.msk.bf16.gmra.mrb[4].mxu1 %vm350_vm0, %v1244_v10  ;;  %p1324_p5 = pnand %p1323_p3, %p1317_p0 }
  0x28   : > { %1158 = vmatmul.mubr.msk.bf16.gmra.mrb[4].mxu0 %vm350_vm0, %v1249_v11  ;;  %vm1605_vm0 = vmor %vm577_vm12, %vm579_vm2  ;;  %vm289_vm2 = vcmask 7168  }
  0xf2   : > { %v1167_v28 = vpop.f32.mrb[0].mxu1 }
  0xf3   : > { %v518_v31 = vpop.f32.mrb[1].mxu1  ;;  %v598_v32 = vsel %vm1553_vm4, -1e+30, %v1167_v28  ;;  %v1155_v40 = vpop.f32.mrb[0].mxu0 }
  0xf4   : > { %664 = vmax.xlane.f32.xlu1 %v598_v32  ;;  %v1168_v34 = vpop.f32.mrb[2].mxu1  ;;  %v596_v35 = vsel %vm1558_vm5, -1e+30, %v518_v31  ;;  %v397_v43 = vpop.f32.mrb[1].mxu0  ;;  %v1628_v1 = vsel %vm1553_vm4, -1e+30, %v1155_v40 }
  0xf5   : > { %660 = vmax.xlane.f32.xlu0 %v596_v35  ;;  %v521_v38 = vpop.f32.mrb[3].mxu1  ;;  %v599_v42 = vsel %vm1573_vm8, -1e+30, %v1168_v34  ;;  %v1156_v45 = vpop.f32.mrb[2].mxu0  ;;  %v588_v63 = vsel %vm1558_vm5, -1e+30, %v397_v43 }
  0xf6   : > { %v597_v44 = vsel %vm1580_vm9, -1e+30, %v521_v38  ;;  %v400_v47 = vpop.f32.mrb[3].mxu0  ;;  %v1632_v2 = vsel %vm1573_vm8, -1e+30, %v1156_v45  ;;  %vm789_vm4 = vcmp.lt.s32.totalorder %v1550_v22, 16 }
  0xf7   : > { %v589_v0 = vsel %vm1580_vm9, -1e+30, %v400_v47  ;;  %vm790_vm5 = vcmp.lt.s32.totalorder %v1542_v16, 16  ;;  %vm794_vm8 = vcmp.lt.s32.totalorder %v1577_v37, 16  ;;  %vm795_vm9 = vcmp.lt.s32.totalorder %v1585_v41, 16 }
  0xf8   : > { %666 = vmax.xlane.f32.xlu1 %v599_v42 }
  0xf9   : > { %662 = vmax.xlane.f32.xlu0 %v597_v44 }
  0xfa   : > { %v1171_v48 = vpop.f32.mrb[4].mxu1 }
  0xfb   : > { %v534_v50 = vpop.f32.mrb[5].mxu1  ;;  %v602_v57 = vsel %vm1605_vm0, -1e+30, %v1171_v48  ;;  %v1159_v58 = vpop.f32.mrb[4].mxu0 }
  0xfc   : > { %v1172_v52 = vpop.f32.mrb[6].mxu1  ;;  %v600_v53 = vsel %vm1594_vm13, -1e+30, %v534_v50  ;;  %v413_v59 = vpop.f32.mrb[5].mxu0  ;;  %v1651_v6 = vsel %vm1605_vm0, -1e+30, %v1159_v58 }
  0xfd   : > { %668 = vmax.xlane.f32.xlu0 %v600_v53  ;;  %v537_v54 = vpop.f32.mrb[7].mxu1  ;;  %v603_v60 = vsel %vm1612_vm1, -1e+30, %v1172_v52  ;;  %v1160_v61 = vpop.f32.mrb[6].mxu0  ;;  %v1641_v4 = vsel %vm1594_vm13, -1e+30, %v413_v59 }
  0xfe   : > { %v601_v56 = vsel %vm1599_vm14, -1e+30, %v537_v54  ;;  %v416_v62 = vpop.f32.mrb[7].mxu0  ;;  %v1636_v3 = vsel %vm1612_vm1, -1e+30, %v1160_v61 }
  0xff   : > { %670 = vmax.xlane.f32.xlu1 %v601_v56  ;;  %v1646_v5 = vsel %vm1599_vm14, -1e+30, %v416_v62 }
 0x101   : > { %672 = vmax.xlane.f32.xlu0 %v602_v57 }
 0x103   : > { %674 = vmax.xlane.f32.xlu1 %v603_v60 }
 0x105   : > { %604 = vmax.xlane.f32.xlu0 %v588_v63 }
 0x107   : > { %606 = vmax.xlane.f32.xlu1 %v589_v0 }
 0x109   : > { %608 = vmax.xlane.f32.xlu0 %v1628_v1 }
 0x10b   : > { %610 = vmax.xlane.f32.xlu1 %v1632_v2 }
 0x10d   : > { %612 = vmax.xlane.f32.xlu0 %v1641_v4 }
 0x10f   : > { %614 = vmax.xlane.f32.xlu1 %v1646_v5 }
 0x111   : > { %616 = vmax.xlane.f32.xlu0 %v1651_v6 }
 0x181   : > { %v665_v7 = vpop.xlane.xlu1 %664 }
 0x182   : > { %v1655_v8 = vsub.f32 %v598_v32, %v665_v7  ;;  %v661_v9 = vpop.xlane.xlu0 %660 }
 0x183   : > { %v1657_v10 = vsub.f32 %v596_v35, %v661_v9 }
 0x184   : > { %v688_v11 = vmul.f32 1.442695, %v1655_v8 }
 0x185   : > { %v684_v12 = vmul.f32 1.442695, %v1657_v10  ;;  %v667_v13 = vpop.xlane.xlu1 %666 }
 0x186   : > { %1250 = vpow2.f32 %v688_v11  ;;  %v1661_v14 = vsub.f32 %v599_v42, %v667_v13  ;;  %v663_v15 = vpop.xlane.xlu0 %662  ;;  %v1426_v11 = vmov 0.0  }
 0x187   : > { %1252 = vpow2.f32 %v684_v12  ;;  %v1663_v17 = vsub.f32 %v597_v44, %v663_v15  ;;  %291 = vst.msk [vmem:[#allocation2 + $0x8] sm:$0xff] %vm289_vm2, %v1426_v11  ;;  %299 = vst.msk [vmem:[#allocation3 + $0x8] sm:$0xff] %vm289_vm2, %v1426_v11 }
 0x188   : > { %v690_v20 = vmul.f32 1.442695, %v1661_v14  ;;  %290 = vst.msk [vmem:[#allocation2] sm:$0xff] %vm289_vm2, %v1426_v11  ;;  %292 = vst.msk [vmem:[#allocation2 + $0x10] sm:$0xff] %vm289_vm2, %v1426_v11 }
 0x189   : > { %v686_v18 = vmul.f32 1.442695, %v1663_v17  ;;  %293 = vst.msk [vmem:[#allocation2 + $0x18] sm:$0xff] %vm289_vm2, %v1426_v11  ;;  %294 = vst.msk [vmem:[#allocation2 + $0x20] sm:$0xff] %vm289_vm2, %v1426_v11 }
 0x18a   : > { %v669_v23 = vpop.xlane.xlu0 %668  ;;  %295 = vst.msk [vmem:[#allocation2 + $0x28] sm:$0xff] %vm289_vm2, %v1426_v11  ;;  %296 = vst.msk [vmem:[#allocation2 + $0x30] sm:$0xff] %vm289_vm2, %v1426_v11 }
 0x18b   : > { %1254 = vpow2.f32 %v686_v18  ;;  %v1667_v24 = vsub.f32 %v600_v53, %v669_v23  ;;  %297 = vst.msk [vmem:[#allocation2 + $0x38] sm:$0xff] %vm289_vm2, %v1426_v11  ;;  %298 = vst.msk [vmem:[#allocation3] sm:$0xff] %vm289_vm2, %v1426_v11 }
 0x18c   : > { %v671_v25 = vpop.xlane.xlu1 %670  ;;  %1256 = vpow2.f32 %v690_v20  ;;  %300 = vst.msk [vmem:[#allocation3 + $0x10] sm:$0xff] %vm289_vm2, %v1426_v11  ;;  %301 = vst.msk [vmem:[#allocation3 + $0x18] sm:$0xff] %vm289_vm2, %v1426_v11 }
 0x18d   : > { %v692_v26 = vmul.f32 1.442695, %v1667_v24  ;;  %v1670_v27 = vsub.f32 %v601_v56, %v671_v25  ;;  %302 = vst.msk [vmem:[#allocation3 + $0x20] sm:$0xff] %vm289_vm2, %v1426_v11  ;;  %303 = vst.msk [vmem:[#allocation3 + $0x28] sm:$0xff] %vm289_vm2, %v1426_v11 }
 0x18e   : > { %v673_v28 = vpop.xlane.xlu0 %672  ;;  %304 = vst.msk [vmem:[#allocation3 + $0x30] sm:$0xff] %vm289_vm2, %v1426_v11  ;;  %305 = vst.msk [vmem:[#allocation3 + $0x38] sm:$0xff] %vm289_vm2, %v1426_v11  ;;  %v854_v22 = vld [vmem:[#allocation3 + $0x8] sm:$0xff] }
 0x18f   : > { %1258 = vpow2.f32 %v692_v26  ;;  %v694_v30 = vmul.f32 1.442695, %v1670_v27  ;;  %v1673_v31 = vsub.f32 %v602_v57, %v673_v28 }
 0x190   : > { %v1251_v32 = vpop.eup %1250  ;;  %v675_v34 = vpop.xlane.xlu1 %674 }
 0x191   : > { %v1253_v35 = vpop.eup %1252  ;;  %v696_v36 = vmul.f32 1.442695, %v1673_v31  ;;  %v1676_v38 = vsub.f32 %v603_v60, %v675_v34  ;;  %704 = vadd.xlane.f32.xlu1 %v1251_v32  ;;  %1260 = vpow2.f32 %v694_v30 }
 0x192   : > { %v605_v39 = vpop.xlane.xlu0 %604  ;;  %700 = vadd.xlane.f32.xlu0 %v1253_v35 }
 0x193   : > { %1262 = vpow2.f32 %v696_v36  ;;  %v698_v40 = vmul.f32 1.442695, %v1676_v38  ;;  %v620_v42 = vsub.f32 %v588_v63, %v605_v39 }
 0x194   : > { %v607_v43 = vpop.xlane.xlu1 %606 }
 0x195   : > { %v1255_v44 = vpop.eup %1254  ;;  %v628_v45 = vmul.f32 1.442695, %v620_v42  ;;  %v621_v46 = vsub.f32 %v589_v0, %v607_v43  ;;  %1264 = vpow2.f32 %v698_v40 }
 0x196   : > { %v609_v47 = vpop.xlane.xlu0 %608  ;;  %618 = vmax.xlane.f32.xlu0 %v1636_v3  ;;  %702 = vadd.xlane.f32.xlu1 %v1255_v44  ;;  %v1257_v50 = vpop.eup %1256 }
 0x197   : > { %1266 = vpow2.f32 %v628_v45  ;;  %v630_v48 = vmul.f32 1.442695, %v621_v46  ;;  %v622_v49 = vsub.f32 %v1628_v1, %v609_v47 }
 0x198   : > { %v611_v51 = vpop.xlane.xlu1 %610 }
 0x199   : > { %v1259_v52 = vpop.eup %1258  ;;  %v632_v53 = vmul.f32 1.442695, %v622_v49  ;;  %v623_v54 = vsub.f32 %v1632_v2, %v611_v51  ;;  %1268 = vpow2.f32 %v630_v48 }
 0x19a   : > { %v613_v55 = vpop.xlane.xlu0 %612  ;;  %708 = vadd.xlane.f32.xlu0 %v1259_v52  ;;  %706 = vadd.xlane.f32.xlu1 %v1257_v50 }
 0x19b   : > { %1270 = vpow2.f32 %v632_v53  ;;  %v634_v56 = vmul.f32 1.442695, %v623_v54  ;;  %v624_v57 = vsub.f32 %v1641_v4, %v613_v55  ;;  %v1261_v58 = vpop.eup %1260 }
 0x19c   : > { %v615_v12 = vpop.xlane.xlu1 %614 }
 0x19d   : > { %v1263_v59 = vpop.eup %1262  ;;  %v636_v60 = vmul.f32 1.442695, %v624_v57  ;;  %1272 = vpow2.f32 %v634_v56  ;;  %v625_v18 = vsub.f32 %v1646_v5, %v615_v12 }
 0x19e   : > { %v617_v61 = vpop.xlane.xlu0 %616  ;;  %712 = vadd.xlane.f32.xlu0 %v1263_v59  ;;  %710 = vadd.xlane.f32.xlu1 %v1261_v58 }
 0x19f   : > { %1274 = vpow2.f32 %v636_v60  ;;  %v626_v62 = vsub.f32 %v1651_v6, %v617_v61  ;;  %v1265_v63 = vpop.eup %1264  ;;  %v638_v28 = vmul.f32 1.442695, %v625_v18 }
 0x1a1   : > { %v1684_v0 = vpop.eup %1266  ;;  %v640_v1 = vmul.f32 1.442695, %v626_v62 }
 0x1a2   : > { %644 = vadd.xlane.f32.xlu0 %v1684_v0  ;;  %714 = vadd.xlane.f32.xlu1 %v1265_v63 }
 0x1a3   : > { %1276 = vpow2.f32 %v640_v1  ;;  %v1687_v2 = vpop.eup %1268 }
 0x1a5   : > { %v1689_v4 = vpop.eup %1270 }
 0x1a6   : > { %648 = vadd.xlane.f32.xlu0 %v1689_v4  ;;  %646 = vadd.xlane.f32.xlu1 %v1687_v2 }
 0x1a7   : > { %v1693_v7 = vpop.eup %1272 }
 0x1a9   : > { %v1695_v9 = vpop.eup %1274 }
 0x1aa   : > { %652 = vadd.xlane.f32.xlu0 %v1695_v9  ;;  %650 = vadd.xlane.f32.xlu1 %v1693_v7 }
 0x1ad   : > { %v1699_v6 = vpop.eup %1276 }
 0x1ae   : > { %656 = vadd.xlane.f32.xlu0 %v1699_v6 }
 0x21e   : > { %v705_v13 = vpop.xlane.xlu1 %704 }
 0x21f   : > { %v701_v15 = vpop.xlane.xlu0 %700  ;;  %1278 = vlog2.f32 %v705_v13 }
 0x220   : > { %1280 = vlog2.f32 %v701_v15 }
 0x223   : > { %v619_v20 = vpop.xlane.xlu0 %618  ;;  %v703_v23 = vpop.xlane.xlu1 %702 }
 0x224   : > { %v627_v25 = vsub.f32 %v1636_v3, %v619_v20  ;;  %1282 = vlog2.f32 %v703_v23 }
 0x226   : > { %v642_v26 = vmul.f32 1.442695, %v627_v25  ;;  %v1124_v25 = vsel %vm789_vm4, 1.0, %v1426_v11 }
 0x227   : > { %v709_v30 = vpop.xlane.xlu0 %708  ;;  %v707_v32 = vpop.xlane.xlu1 %706 }
 0x228   : > { %1284 = vpow2.f32 %v642_v26 }
 0x229   : > { %1286 = vlog2.f32 %v709_v30  ;;  %v1279_v36 = vpop.eup %1278  ;;  %v855_v30 = vld [vmem:[#allocation3 + $0x10] sm:$0xff] }
 0x22a   : > { %1288 = vlog2.f32 %v707_v32  ;;  %v1281_v39 = vpop.eup %1280  ;;  %v721_v40 = vmul.f32 0.6931472, %v1279_v36 }
 0x22b   : > { %1290 = vpow2.f32 %v638_v28  ;;  %v713_v34 = vpop.xlane.xlu0 %712  ;;  %v711_v35 = vpop.xlane.xlu1 %710  ;;  %v717_v44 = vmul.f32 0.6931472, %v1281_v39  ;;  %v1127_v39 = vsel %vm792_vm6, 1.0, %v1426_v11 }
 0x22c   : > { %1292 = vlog2.f32 %v713_v34  ;;  %v734_v51 = vsub.f32 %v1655_v8, %v721_v40  ;;  %v1772_v40 = vsel %vm791_vm7, 1.0, %v1426_v11 }
 0x22d   : > { %1294 = vlog2.f32 %v711_v35 }
 0x22e   : > { %v1283_v5 = vpop.eup %1282  ;;  %v750_v61 = vmul.f32 %v1689_v4, %v734_v51  ;;  %v859_v51 = vld [vmem:[#allocation3 + $0x30] sm:$0xff] }
 0x22f   : > { %v719_v42 = vmul.f32 0.6931472, %v1283_v5  ;;  %v645_v43 = vpop.xlane.xlu0 %644  ;;  %v715_v3 = vpop.xlane.xlu1 %714 }
 0x230   : > { %1296 = vrcp.f32 %v645_v43 }
 0x231   : > { %1298 = vlog2.f32 %v715_v3  ;;  %v733_v45 = vsub.f32 %v1663_v17, %v719_v42  ;;  %v732_v17 = vsub.f32 %v1657_v10, %v717_v44  ;;  %v856_v44 = vld [vmem:[#allocation3 + $0x18] sm:$0xff] }
 0x232   : > { %v1737_v46 = vpop.eup %1284 }
 0x233   : > { %v1287_v47 = vpop.eup %1286  ;;  %v649_v48 = vpop.xlane.xlu0 %648  ;;  %658 = vadd.xlane.f32.xlu1 %v1737_v46  ;;  %v749_v50 = vmul.f32 %v1687_v2, %v733_v45  ;;  %v748_v63 = vmul.f32 %v1684_v0, %v732_v17  ;;  %v1752_v2 = vsel %vm788_vm3, 1.0, %v1426_v11  ;;  %v829_v17 = vld [vmem:[#allocation2 + $0x8] sm:$0xff] }
 0x234   : > { %v647_v49 = vpop.xlane.xlu1 %646  ;;  %v1289_v52 = vpop.eup %1288  ;;  %v725_v53 = vmul.f32 0.6931472, %v1287_v47  ;;  %1300 = vrcp.f32 %v649_v48 }
 0x235   : > { %v1291_v54 = vpop.eup %1290  ;;  %v723_v55 = vmul.f32 0.6931472, %v1289_v52  ;;  %1302 = vrcp.f32 %v647_v49  ;;  %758 = vadd.xlane.f32.xlu0 %v749_v50 }
 0x236   : > { %v1293_v56 = vpop.eup %1292  ;;  %v736_v62 = vsub.f32 %v1667_v24, %v725_v53 }
 0x237   : > { %v1295_v57 = vpop.eup %1294  ;;  %v729_v58 = vmul.f32 0.6931472, %v1293_v56  ;;  %v653_v59 = vpop.xlane.xlu0 %652  ;;  %654 = vadd.xlane.f32.xlu1 %v1291_v54  ;;  %v735_v10 = vsub.f32 %v1661_v14, %v723_v55  ;;  %v853_v14 = vld [vmem:[#allocation3] sm:$0xff] }
 0x238   : > { %v651_v60 = vpop.xlane.xlu1 %650  ;;  %1304 = vrcp.f32 %v653_v59  ;;  %v727_v8 = vmul.f32 0.6931472, %v1295_v57  ;;  %v752_v19 = vmul.f32 %v1695_v9, %v736_v62  ;;  %v1125_v9 = vsel %vm790_vm5, 1.0, %v1426_v11 }
 0x239   : > { %1306 = vrcp.f32 %v651_v60  ;;  %760 = vadd.xlane.f32.xlu0 %v750_v61  ;;  %v738_v13 = vsub.f32 %v1673_v31, %v729_v58  ;;  %v751_v15 = vmul.f32 %v1693_v7, %v735_v10  ;;  %v830_v61 = vld [vmem:[#allocation2 + $0x10] sm:$0xff]  ;;  %v828_v10 = vld [vmem:[#allocation2] sm:$0xff] }
 0x23a   : > { %v1748_v1 = vpop.eup %1296  ;;  %v737_v18 = vsub.f32 %v1670_v27, %v727_v8 }
 0x23b   : > { %v1299_v4 = vpop.eup %1298  ;;  %v780_v24 = vmul.f32 %v1748_v1, %v645_v43  ;;  %v657_v12 = vpop.xlane.xlu0 %656  ;;  %756 = vadd.xlane.f32.xlu1 %v748_v63  ;;  %v754_v16 = vmul.f32 %v1699_v6, %v738_v13 }
 0x23c   : > { %1308 = vrcp.f32 %v657_v12  ;;  %v731_v0 = vmul.f32 0.6931472, %v1299_v4  ;;  %v753_v27 = vmul.f32 %v1291_v54, %v737_v18  ;;  %v832_v18 = vld [vmem:[#allocation2 + $0x20] sm:$0xff] }
 0x23d   : > { %764 = vadd.xlane.f32.xlu0 %v752_v19  ;;  %v820_v20 = vmul.f32 %v1752_v2, %v780_v24 }
 0x23e   : > { %v1301_v23 = vpop.eup %1300  ;;  %v739_v32 = vsub.f32 %v1676_v38, %v731_v0  ;;  %v857_v38 = vld [vmem:[#allocation3 + $0x20] sm:$0xff] }
 0x23f   : > { %v1303_v31 = vpop.eup %1302  ;;  %v782_v26 = vmul.f32 %v1301_v23, %v649_v48  ;;  %762 = vadd.xlane.f32.xlu1 %v751_v15  ;;  %v861_v28 = vadd.f32 %v853_v14, %v820_v20  ;;  %v1780_v48 = vsel %vm794_vm8, 1.0, %v1426_v11  ;;  %v1130_v14 = vsel %vm795_vm9, 1.0, %v1426_v11 }
 0x240   : > { %v781_v7 = vmul.f32 %v1303_v31, %v647_v49  ;;  %v755_v43 = vmul.f32 %v1737_v46, %v739_v32  ;;  %v1128_v32 = vsel %vm793_vm10, 1.0, %v1426_v11 }
 0x241   : > { %768 = vadd.xlane.f32.xlu0 %v754_v16  ;;  %v822_v34 = vmul.f32 %v1125_v9, %v782_v26  ;;  %869 = vst.msk [vmem:[#allocation3] sm:$0xff] %vm289_vm2, %v861_v28 }
 0x242   : > { %v1305_v35 = vpop.eup %1304  ;;  %v821_v36 = vmul.f32 %v1124_v25, %v781_v7 }
 0x243   : > { %v1307_v6 = vpop.eup %1306  ;;  %v784_v5 = vmul.f32 %v1305_v35, %v653_v59  ;;  %766 = vadd.xlane.f32.xlu1 %v753_v27  ;;  %v863_v29 = vadd.f32 %v855_v30, %v822_v34  ;;  %v834_v34 = vld [vmem:[#allocation2 + $0x30] sm:$0xff] }
 0x244   : > { %v783_v21 = vmul.f32 %v1307_v6, %v651_v60  ;;  %v862_v42 = vadd.f32 %v854_v22, %v821_v36 }
 0x245   : > { %871 = vst.msk [vmem:[#allocation3 + $0x10] sm:$0xff] %vm289_vm2, %v863_v29  ;;  %v824_v3 = vmul.f32 %v1127_v39, %v784_v5  ;;  %v858_v29 = vld [vmem:[#allocation3 + $0x28] sm:$0xff] }
 0x246   : > { %v1309_v45 = vpop.eup %1308  ;;  %870 = vst.msk [vmem:[#allocation3 + $0x8] sm:$0xff] %vm289_vm2, %v862_v42  ;;  %v823_v47 = vmul.f32 %v1772_v40, %v783_v21 }
 0x247   : > { %v786_v49 = vmul.f32 %v1309_v45, %v657_v12  ;;  %770 = vadd.xlane.f32.xlu1 %v755_v43  ;;  %v865_v37 = vadd.f32 %v857_v38, %v824_v3  ;;  %v833_v43 = vld [vmem:[#allocation2 + $0x28] sm:$0xff] }
 0x248   : > { %v864_v50 = vadd.f32 %v856_v44, %v823_v47 }
 0x249   : > { %873 = vst.msk [vmem:[#allocation3 + $0x20] sm:$0xff] %vm289_vm2, %v865_v37  ;;  %v826_v46 = vmul.f32 %v1780_v48, %v786_v49 }
 0x24a   : > { %872 = vst.msk [vmem:[#allocation3 + $0x18] sm:$0xff] %vm289_vm2, %v864_v50 }
 0x24b   : > { %v867_v52 = vadd.f32 %v859_v51, %v826_v46  ;;  %v835_v51 = vld [vmem:[#allocation2 + $0x38] sm:$0xff] }
 0x24c   : > { %v916_v42 = vld [vmem:[#allocation3 + $0x10] sm:$0xff] }
 0x24d   : > { %875 = vst.msk [vmem:[#allocation3 + $0x30] sm:$0xff] %vm289_vm2, %v867_v52  ;;  %v915_v0 = vld [vmem:[#allocation3 + $0x8] sm:$0xff]  ;;  %v925_v47 = vsel %vm289_vm2, %v916_v42, 0.0 }
 0x251   : > { %v917_v3 = vld [vmem:[#allocation3 + $0x18] sm:$0xff] }
 0x252   : > { %v927_v46 = vsel %vm289_vm2, %v917_v3, 0.0 }
 0x2c0   : > { %v659_v53 = vpop.xlane.xlu1 %658 }
 0x2c1   : > { %1310 = vrcp.f32 %v659_v53 }
 0x2c2   : > { %v759_v54 = vpop.xlane.xlu0 %758 }
 0x2c3   : > { %v773_v55 = vmul.f32 %v1303_v31, %v759_v54  ;;  %v831_v31 = vld [vmem:[#allocation2 + $0x18] sm:$0xff] }
 0x2c4   : > { %v655_v56 = vpop.xlane.xlu1 %654 }
 0x2c5   : > { %v813_v57 = vmul.f32 %v1124_v25, %v773_v55  ;;  %1312 = vrcp.f32 %v655_v56  ;;  %v860_v25 = vld [vmem:[#allocation3 + $0x38] sm:$0xff] }
 0x2c6   : > { %v761_v58 = vpop.xlane.xlu0 %760 }
 0x2c7   : > { %v837_v59 = vadd.f32 %v829_v17, %v813_v57  ;;  %v774_v60 = vmul.f32 %v1301_v23, %v761_v58  ;;  %v918_v58 = vld [vmem:[#allocation3 + $0x20] sm:$0xff] }
 0x2c8   : > { %v757_v62 = vpop.xlane.xlu1 %756 }
 0x2c9   : > { %846 = vst.msk [vmem:[#allocation2 + $0x8] sm:$0xff] %vm289_vm2, %v837_v59  ;;  %v814_v8 = vmul.f32 %v1125_v9, %v774_v60  ;;  %v772_v63 = vmul.f32 %v1748_v1, %v757_v62  ;;  %v914_v9 = vld [vmem:[#allocation3] sm:$0xff] }
 0x2ca   : > { %v765_v4 = vpop.xlane.xlu0 %764 }
 0x2cb   : > { %v1311_v24 = vpop.eup %1310  ;;  %v838_v12 = vadd.f32 %v830_v61, %v814_v8  ;;  %v812_v19 = vmul.f32 %v1752_v2, %v772_v63  ;;  %v776_v13 = vmul.f32 %v1305_v35, %v765_v4  ;;  %v923_v2 = vsel %vm289_vm2, %v915_v0, 0.0 }
 0x2cc   : > { %v787_v15 = vmul.f32 %v1311_v24, %v659_v53  ;;  %v763_v20 = vpop.xlane.xlu1 %762 }
 0x2cd   : > { %847 = vst.msk [vmem:[#allocation2 + $0x10] sm:$0xff] %vm289_vm2, %v838_v12  ;;  %v836_v41 = vadd.f32 %v828_v10, %v812_v19  ;;  %v816_v23 = vmul.f32 %v1127_v39, %v776_v13  ;;  %v775_v1 = vmul.f32 %v1307_v6, %v763_v20  ;;  %v922_v39 = vsel %vm289_vm2, %v914_v9, 0.0  ;;  %v920_v12 = vld [vmem:[#allocation3 + $0x30] sm:$0xff] }
 0x2ce   : > { %v769_v26 = vpop.xlane.xlu0 %768  ;;  %v827_v16 = vmul.f32 %v1130_v14, %v787_v15  ;;  %v929_v10 = vsel %vm289_vm2, %v918_v58, 0.0 }
 0x2cf   : > { %v1313_v28 = vpop.eup %1312  ;;  %845 = vst.msk [vmem:[#allocation2] sm:$0xff] %vm289_vm2, %v836_v41  ;;  %v840_v7 = vadd.f32 %v832_v18, %v816_v23  ;;  %v815_v30 = vmul.f32 %v1772_v40, %v775_v1  ;;  %v778_v27 = vmul.f32 %v1309_v45, %v769_v26  ;;  %v924_v40 = vadd.f32 %v923_v2, %v922_v39 }
 0x2d0   : > { %v785_v22 = vmul.f32 %v1313_v28, %v655_v56  ;;  %v767_v35 = vpop.xlane.xlu1 %766  ;;  %v868_v36 = vadd.f32 %v860_v25, %v827_v16  ;;  %v881_v49 = vld [vmem:[#allocation2 + $0x8] sm:$0xff]  ;;  %v933_v1 = vsel %vm289_vm2, %v920_v12, 0.0 }
 0x2d1   : > { %849 = vst.msk [vmem:[#allocation2 + $0x20] sm:$0xff] %vm289_vm2, %v840_v7  ;;  %v839_v6 = vadd.f32 %v831_v31, %v815_v30  ;;  %v818_v5 = vmul.f32 %v1780_v48, %v778_v27  ;;  %v777_v21 = vmul.f32 %v1313_v28, %v767_v35  ;;  %v926_v50 = vadd.f32 %v925_v47, %v924_v40 }
 0x2d2   : > { %v825_v38 = vmul.f32 %v1128_v32, %v785_v22  ;;  %876 = vst.msk [vmem:[#allocation3 + $0x38] sm:$0xff] %vm289_vm2, %v868_v36  ;;  %v889_v17 = vsel %vm289_vm2, %v881_v49, 0.0 }
 0x2d3   : > { %848 = vst.msk [vmem:[#allocation2 + $0x18] sm:$0xff] %vm289_vm2, %v839_v6  ;;  %v842_v33 = vadd.f32 %v834_v34, %v818_v5  ;;  %v817_v11 = vmul.f32 %v1128_v32, %v777_v21  ;;  %v928_v59 = vadd.f32 %v927_v46, %v926_v50 }
 0x2d4   : > { %v866_v44 = vadd.f32 %v858_v29, %v825_v38  ;;  %v771_v45 = vpop.xlane.xlu1 %770  ;;  %v882_v53 = vld [vmem:[#allocation2 + $0x10] sm:$0xff] }
 0x2d5   : > { %851 = vst.msk [vmem:[#allocation2 + $0x30] sm:$0xff] %vm289_vm2, %v842_v33  ;;  %v841_v48 = vadd.f32 %v833_v43, %v817_v11  ;;  %v779_v37 = vmul.f32 %v1311_v24, %v771_v45  ;;  %v891_v60 = vsel %vm289_vm2, %v882_v53, 0.0  ;;  %v930_v19 = vadd.f32 %v929_v10, %v928_v59 }
 0x2d6   : > { %874 = vst.msk [vmem:[#allocation3 + $0x28] sm:$0xff] %vm289_vm2, %v866_v44  ;;  %v880_v52 = vld [vmem:[#allocation2] sm:$0xff] }
 0x2d7   : > { %850 = vst.msk [vmem:[#allocation2 + $0x28] sm:$0xff] %vm289_vm2, %v841_v48  ;;  %v819_v54 = vmul.f32 %v1130_v14, %v779_v37  ;;  %v888_v55 = vsel %vm289_vm2, %v880_v52, 0.0 }
 0x2d8   : > { %v890_v56 = vadd.f32 %v889_v17, %v888_v55  ;;  %v884_v62 = vld [vmem:[#allocation2 + $0x20] sm:$0xff] }
 0x2d9   : > { %v843_v57 = vadd.f32 %v835_v51, %v819_v54  ;;  %v895_v13 = vsel %vm289_vm2, %v884_v62, 0.0  ;;  %v921_v20 = vld [vmem:[#allocation3 + $0x38] sm:$0xff] }
 0x2da   : > { %v883_v61 = vld [vmem:[#allocation2 + $0x18] sm:$0xff]  ;;  %v892_v8 = vadd.f32 %v891_v60, %v890_v56  ;;  %v935_v26 = vsel %vm289_vm2, %v921_v20, 0.0 }
 0x2db   : > { %852 = vst.msk [vmem:[#allocation2 + $0x38] sm:$0xff] %vm289_vm2, %v843_v57  ;;  %v893_v63 = vsel %vm289_vm2, %v883_v61, 0.0 }
 0x2dc   : > { %v894_v4 = vadd.f32 %v893_v63, %v892_v8  ;;  %v886_v15 = vld [vmem:[#allocation2 + $0x30] sm:$0xff] }
 0x2dd   : > { %v919_v24 = vld [vmem:[#allocation3 + $0x28] sm:$0xff]  ;;  %v899_v31 = vsel %vm289_vm2, %v886_v15, 0.0 }
 0x2de   : > { %v931_v14 = vsel %vm289_vm2, %v919_v24, 0.0  ;;  %v885_v0 = vld [vmem:[#allocation2 + $0x28] sm:$0xff]  ;;  %v896_v18 = vadd.f32 %v895_v13, %v894_v4 }
 0x2df   : > { %v932_v41 = vadd.f32 %v931_v14, %v930_v19  ;;  %v897_v23 = vsel %vm289_vm2, %v885_v0, 0.0 }
 0x2e0   : > { %v898_v25 = vadd.f32 %v897_v23, %v896_v18 }
 0x2e1   : > { %v934_v9 = vadd.f32 %v933_v1, %v932_v41 }
 0x2e2   : > { %v887_v16 = vld [vmem:[#allocation2 + $0x38] sm:$0xff]  ;;  %v900_v2 = vadd.f32 %v899_v31, %v898_v25 }
 0x2e3   : > { %v936_v28 = vadd.f32 %v935_v26, %v934_v9  ;;  %v901_v7 = vsel %vm289_vm2, %v887_v16, 0.0 }
 0x2e4   : > { %v902_v30 = vadd.f32 %v901_v7, %v900_v2 }
 0x2e5   : > { %937 = vadd.xlane.f32.xlu1 %v936_v28 }
 0x2e6   : > { %903 = vadd.xlane.f32.xlu0 %v902_v30 }
 0x372   : > { %v938_v27 = vpop.xlane.xlu1 %937 }
 0x373   : > { %v939_v32 = vrot.slane %v938_v27, 4  ;;  %v904_v22 = vpop.xlane.xlu0 %903 }
 0x374   : > { %v905_v34 = vrot.slane %v904_v22, 4 }
 0x375   : > { %v940_v35 = vadd.f32 %v939_v32, %v938_v27 }
 0x376   : > { %v906_v36 = vadd.f32 %v905_v34, %v904_v22 }
 0x377   : > { %v941_v39 = vrot.slane %v940_v35, 2 }
 0x378   : > { %v907_v6 = vrot.slane %v906_v36, 2 }
 0x379   : > { %v942_v5 = vadd.f32 %v941_v39, %v940_v35 }
 0x37a   : > { %v908_v29 = vadd.f32 %v907_v6, %v906_v36 }
 0x37b   : > { %v943_v21 = vrot.slane %v942_v5, 1 }
 0x37c   : > { %v909_v42 = vrot.slane %v908_v29, 1 }
 0x37d   : > { %v944_v40 = vadd.f32 %v943_v21, %v942_v5 }
 0x37e   : > { %v910_v38 = vadd.f32 %v909_v42, %v908_v29 }
 0x380   : > { %1173 = vpush %v910_v38 }
 0x381   : > { %1175 = vpush %v944_v40 }
 0x3b1   : > { %s1174_s25 = spop %1173 }
 0x3b2   : > { %v912_v43 = vstv %s1174_s25  ;;  %s1176_s27 = spop %1175 }
 0x3b3   : > { %913 = vst [vmem:[%s260_s13] sm:$0xff] %v912_v43  ;;  %v946_v33 = vstv %s1176_s27 }
 0x3b4   : > { %947 = vst [vmem:[%s267_s11] sm:$0xff] %v946_v33 }
 0x3b5   : > { %1327 = shalt.err (!%p1324_p5)
}
 0x3b6   : > { %s1328_s11 = scalar_lea.hbm %s1832_s24, 128  ;;  %s1332_s25 = scalar_lea.hbm %s1911_s4, 256 }
 0x3b7   : > { %p1329_p6 = scmp.ne.s32.totalorder %s1832_s24, %s1328_s11  ;;  %p1333_p10 = scmp.lt.u32.totalorder %s1832_s24, %s1911_s4 }
 0x3b8   : > { %p1334_p11 = scmp.lt.u32.totalorder %s1332_s25, %s1328_s11  ;;  %p1336_p13 = scmp.lt.u32.totalorder %s1328_s11, %s1832_s24 }
 0x3b9   : > { %p1330_p7 = pnand %p1329_p6, %p1499_p4 }
 0x3ba   : > { %p1335_p12 = por %p1334_p11, %p1333_p10 }
 0x3bb   : > { %p1331_p9 = pneg %p1330_p7 }
 0x3bc   : > { %p1337_p0 = por %p1336_p13, %p1335_p12 }
 0x3be   : > { %p1338_p1 = pnand %p1337_p0, %p1331_p9 }
 0x3c0   : > { %1341 = shalt.err (!%p1338_p1)
}
 0x3c1   : > { %1177 = dma.vmem_to_hbm [thread:$0]  (%p1499_p4), %s1834_s14, 128, %s1832_s24, %s949_s21  }
 0x3c2   : > { %s954_s0 = scalar_lea.sflag [#allocation7], %s1823_s9  ;;  %s1342_s7 = scalar_lea.vmem %s1827_s12, 128 }
 0x3c3   : > { %p1343_p2 = scmp.ne.s32.totalorder %s1827_s12, %s1342_s7  ;;  %s1428_s10 = smov [#allocation6]  }
 0x3c4   : > { %s1346_s16 = sshll.u32 %s1428_s10, 4  ;;  %s1347_s16 = int_to_ptr.vmem [resolvable:$false] %s1346_s16 }
 0x3c5   : > { %p1344_p3 = pnand %p1343_p2, %p1499_p4  ;;  %s1348_s17 = scalar_lea.vmem %s1347_s16, 256 }
 0x3c6   : > { %p1349_p6 = scmp.lt.s32.totalorder %s1827_s12, %s1347_s16  ;;  %p1350_p7 = scmp.lt.s32.totalorder %s1348_s17, %s1342_s7 }
 0x3c7   : > { %p1345_p5 = pneg %p1344_p3 }
 0x3c8   : > { %p1351_p9 = por %p1350_p7, %p1349_p6 }
 0x3ca   : > { %p1352_p10 = pnand %p1351_p9, %p1345_p5 }
 0x3cc   : > { %1355 = shalt.err (!%p1352_p10)
}
 0x3cd   : > { %s1356_s9 = scalar_lea.hbm %s1839_s8, 128  ;;  %s1360_s21 = scalar_lea.hbm %s1912_s5, 256 }
 0x3ce   : > { %p1357_p11 = scmp.ne.s32.totalorder %s1839_s8, %s1356_s9  ;;  %p1361_p0 = scmp.lt.u32.totalorder %s1839_s8, %s1912_s5 }
 0x3cf   : > { %p1362_p1 = scmp.lt.u32.totalorder %s1360_s21, %s1356_s9  ;;  %p1364_p3 = scmp.lt.u32.totalorder %s1356_s9, %s1839_s8 }
 0x3d0   : > { %p1358_p12 = pnand %p1357_p11, %p1499_p4 }
 0x3d1   : > { %p1363_p2 = por %p1362_p1, %p1361_p0 }
 0x3d2   : > { %p1359_p13 = pneg %p1358_p12 }
 0x3d3   : > { %p1365_p5 = por %p1364_p3, %p1363_p2 }
 0x3d5   : > { %p1366_p6 = pnand %p1365_p5, %p1359_p13 }
 0x3d7   : > { %1369 = shalt.err (!%p1366_p6)
}
 0x3d8   : > { %1178 = dma.vmem_to_hbm [thread:$0]  (%p1499_p4), %s1827_s12, 128, %s1839_s8, %s954_s0  }
 0x3d9 PF: > { %p1188_p7 = scmp.ge.s32.totalorder %s1424_s23, 2  ;;  %s992_s15 = sand.u32 1, %s1404_s18  }
 0x3da   : > { %s993_s25 = scalar_lea.sflag [#allocation5], %s992_s15 }
 0x3db   : > { %p1182_p9 = pnand %p1188_p7, %p1506_p8 }
 0x3dd   : > { %1395 = dma.done.wait (!%p1182_p9), %s993_s25, 128  }
 0x3de   : > { %1397 = vsyncadd (!%p1182_p9), %s993_s25, 4294967168  ;;  %s1002_s27 = scalar_lea.sflag [#allocation7], %s992_s15 }
 0x3df   : > { %1399 = dma.done.wait (!%p1182_p9), %s1002_s27, 128  }
 0x3e0   : > { %1401 = vsyncadd (!%p1182_p9), %s1002_s27, 4294967168  ;;  %s22_s23 = sadd.s32 1, %s1424_s23   ;;  %s1933_s18 = smov %s1408_s19 }
 0x3e1   : > { %p19_p10 = scmp.ge.s32.totalorder %s22_s23, 4   ;;  %s1934_s19 = smov %s1412_s20 }
 0x3e2   : > { %s1935_s20 = smov %s1512_s6  ;;  %s1936_s21 = smov %s1420_s22 }
 0x3e3   : > { %s1937_s22 = smov %s1939_s26  ;;  %21 = sbr.rel (!%p19_p10) target bundleno = 8 (0x8), region = 99 }
 0x3ea   :  { %1007 = vsyncpa [#allocation5], 1 }
 0x3eb   :  { %1009 = vsyncpa [#allocation5 + $0x1], 1 }
 0x3ec   :  { %1010 = vsyncpa [#allocation7], 1 }
 0x3ed   :  { %1012 = vsyncpa [#allocation7 + $0x1], 1 }

// kernel: tpu_custom_call.1
= control target key start
LH: loop header
LB: loop body
LE: loop exit
PB: predicated region body
PF: predicated region fallthrough
CT: control target
= control target key end

     0   :  { %s1907_s0 = inlined_call_operand.vmem [shape: bf16[128,32], index: 0, kind: input, shape index: {}]   ;;  %s1908_s1 = inlined_call_operand.vmem [shape: bf16[128,32], index: 1, kind: input, shape index: {}]   ;;  %s1909_s2 = inlined_call_operand.vmem [shape: bf16[32,128], index: 2, kind: input, shape index: {}]   ;;  %s1910_s3 = inlined_call_operand.vmem [shape: bf16[32,128], index: 3, kind: input, shape index: {}]   ;;  %s1911_s4 = inlined_call_operand.hbm [shape: f32[2,8,128], index: 4, kind: output, shape index: {0}]   ;;  %s1912_s5 = inlined_call_operand.hbm [shape: f32[2,8,128], index: 5, kind: output, shape index: {1}]  }
   0x1   :  { %1913 = sst [smem:[#allocation10_spill]] %s1907_s0 }
   0x2   :  { %11 = vsyncpa [#allocation5], 0 }
   0x3   :  { %13 = vsyncpa [#allocation5 + $0x1], 0 }
   0x4   :  { %14 = vsyncpa [#allocation7], 0 }
   0x5   :  { %16 = vsyncpa [#allocation7 + $0x1], 0  ;;  %s1459_s18 = smov 0   ;;  %s1461_s19 = smov 0  }
   0x6   :  { %s1463_s20 = smov 0   ;;  %s1465_s21 = smov 0  }
   0x7   :  { %s1467_s22 = smov 0   ;;  %s1469_s23 = smov 0  }
   0x8 LB: > { %s1091_s24 = sadd.s32 4294967295, %s1424_s23   ;;  %s1092_s25 = sadd.s32 4294967294, %s1424_s23   ;;  %s1424_s23 = sphi %s1469_s23, %s22_s23   ;;  %s1420_s22 = sphi %s1467_s22, %s1937_s22   ;;  %s1416_s21 = sphi %s1465_s21, %s1936_s21   ;;  %s1412_s20 = sphi %s1463_s20, %s1935_s20   ;;  %s1408_s19 = sphi %s1461_s19, %s1934_s19   ;;  %s1404_s18 = sphi %s1459_s18, %s1933_s18  }
   0x9   : > { %s34_s26 = sadd.s32 1, %s1420_s22  ;;  %s139_s27 = sadd.s32 1, %s1412_s20 }
   0xa   : > { %p36_p0 = scmp.ge.s32.totalorder %s34_s26, 2  ;;  %p149_p1 = scmp.ne.s32.totalorder %s1412_s20, %s1408_s19 }
   0xb   : > { %p150_p2 = scmp.eq.s32.totalorder %s1091_s24, 1  ;;  %p155_p3 = scmp.ne.s32.totalorder %s1408_s19, %s1404_s18 }
   0xc   : > { %s1939_s26 = smov (%p36_p0, %s34_s26), 0  ;;  %p156_p5 = scmp.eq.s32.totalorder %s1092_s25, 1 }
   0xd   : > { %p1499_p4 = por %p150_p2, %p149_p1  ;;  %s136_s29 = ssub.s32 %s1420_s22, %s1939_s26 }
   0xe   : > { %p1095_p6 = scmp.ge.s32.totalorder %s1424_s23, 1  ;;  %p137_p7 = scmp.eq.s32.totalorder %s136_s29, 0 }
   0xf   : > { %p1506_p8 = por %p156_p5, %p155_p3  ;;  %p228_p9 = scmp.lt.s32.totalorder %s1424_s23, 3 }
  0x10   : > { %s1512_s6 = scalar_select %p137_p7, %s1412_s20, %s139_s27  }
  0x11   : > { %p229_p10 = pnand %p1095_p6, %p228_p9 }
  0x12   : > { %v1238_v0 = vld [vmem:[%s1910_s3] sm:$0xff] (!%p229_p10)   ;;  %s1098_s9 = sshll.u32 (!%p229_p10), %s1416_s21, 3  ;;  %v1239_v1 = vld [vmem:[%s1910_s3 + $0x8] sm:$0xff] (!%p229_p10)   ;;  %vm350_vm0 = vcmask (!%p229_p10), 261120   ;;  %s1916_s0 = sld [smem:[#allocation10_spill]] (!%p229_p10)  ;;  %v551_v12 = vlaneseq (!%p229_p10) }
  0x13   : > { %232 = sbr.rel (%p229_p10) target bundleno = 985 (0x3d9), region = 36  ;;  %p270_p11 = scmp.lt.s32.totalorder (!%p229_p10), %s1098_s9, 15  ;;  %1161 = vmatprep.subr.bf16.mxu1 (!%p229_p10), %v1238_v0  ;;  %v1243_v2 = vld [vmem:[%s1909_s2] sm:$0xff] (!%p229_p10)   ;;  %v1245_v3 = vld [vmem:[%s1909_s2 + $0x8] sm:$0xff] (!%p229_p10)  }
  0x14   : > { %1162 = vmatpush3.bf16.msra.mxu1 (!%p229_p10), %v1238_v0  ;;  %1149 = vmatprep.subr.bf16.mxu0 (!%p229_p10), %v1243_v2  ;;  %v552_v13 = vshrl.u32 (!%p229_p10), %v551_v12, 7  ;;  %s1122_s8 = sshll.u32 (!%p229_p10), %s1416_s21, 6  ;;  %v570_v17 = vand.u32 (!%p229_p10), 127, %v551_v12  ;;  %s1133_s15 = sshll.u32 (!%p229_p10), %s1416_s21, 7 }
  0x15   : > { %1163 = vmatprep.subr.bf16.mxu1 (!%p229_p10), %v1239_v1  ;;  %1150 = vmatpush3.bf16.msra.mxu0 (!%p229_p10), %v1243_v2  ;;  %v560_v15 = vstv (!%p229_p10), %s1122_s8  ;;  %s1832_s24 = scalar_lea.hbm (!%p229_p10), %s1911_s4, %s1133_s15  ;;  %s1839_s8 = scalar_lea.hbm (!%p229_p10), %s1912_s5, %s1133_s15 }
  0x16   : > { %1151 = vmatprep.subr.bf16.mxu0 (!%p229_p10), %v1245_v3  ;;  %v554_v14 = vadd.s32 (!%p229_p10), 16, %v552_v13  ;;  %v555_v18 = vadd.s32 (!%p229_p10), 24, %v552_v13  ;;  %v1544_v19 = vadd.s32 (!%p229_p10), %v560_v15, %v552_v13  ;;  %v553_v20 = vadd.s32 (!%p229_p10), 8, %v552_v13 }
  0x17   : > { %vm579_vm2 = vcmp.ge.s32.totalorder (!%p229_p10), %v570_v17, 16  ;;  %v556_v23 = vadd.s32 (!%p229_p10), 32, %v552_v13  ;;  %v557_v24 = vadd.s32 (!%p229_p10), 40, %v552_v13  ;;  %v558_v26 = vadd.s32 (!%p229_p10), 48, %v552_v13 }
  0x18   : > { %1164 = vmatpush3.bf16.msra.mxu1 (!%p229_p10), %v1239_v1  ;;  %v1542_v16 = vadd.s32 (!%p229_p10), %v560_v15, %v554_v14  ;;  %v1547_v21 = vadd.s32 (!%p229_p10), %v560_v15, %v555_v18  ;;  %vm571_vm3 = vcmp.eq.s32.totalorder (!%p229_p10), %v570_v17, %v1544_v19  ;;  %v1550_v22 = vadd.s32 (!%p229_p10), %v560_v15, %v553_v20 }
  0x19   : > { %1152 = vmatpush3.bf16.msra.mxu0 (!%p229_p10), %v1245_v3  ;;  %vm1558_vm5 = vmor (!%p229_p10), %vm571_vm3, %vm579_vm2  ;;  %v1564_v29 = vadd.s32 (!%p229_p10), %v560_v15, %v556_v23  ;;  %v559_v30 = vadd.s32 (!%p229_p10), 56, %v552_v13  ;;  %v1568_v33 = vadd.s32 (!%p229_p10), %v560_v15, %v557_v24  ;;  %v1577_v37 = vadd.s32 (!%p229_p10), %v560_v15, %v558_v26 }
  0x1a   : > { %s1941_s9 = smov (!%p270_p11, %s1098_s9), 15  ;;  %vm573_vm1 = vcmp.eq.s32.totalorder %v570_v17, %v1542_v16  ;;  %vm574_vm6 = vcmp.eq.s32.totalorder %v570_v17, %v1547_v21  ;;  %vm572_vm7 = vcmp.eq.s32.totalorder %v570_v17, %v1550_v22  ;;  %vm788_vm3 = vcmp.lt.s32.totalorder %v1544_v19, 16 }
  0x1b   : > { %s1099_s16 = sshll.u32 %s1941_s9, 2  ;;  %vm1553_vm4 = vmor %vm573_vm1, %vm579_vm2  ;;  %vm575_vm10 = vcmp.eq.s32.totalorder %v570_v17, %v1564_v29  ;;  %v1585_v41 = vadd.s32 %v560_v15, %v559_v30  ;;  %vm576_vm11 = vcmp.eq.s32.totalorder %v570_v17, %v1568_v33  ;;  %vm577_vm12 = vcmp.eq.s32.totalorder %v570_v17, %v1577_v37  ;;  %s1823_s9 = sand.u32 1, %s1408_s19  }
  0x1c   : > { %s281_s25 = scalar_lea.vmem %s1908_s1, %s1099_s16  ;;  %s273_s7 = scalar_lea.vmem %s1916_s0, %s1099_s16  ;;  %vm1573_vm8 = vmor %vm574_vm6, %vm579_vm2  ;;  %vm792_vm6 = vcmp.lt.s32.totalorder %v1564_v29, 16 }
  0x1d   : > { %v1240_v4 = vld [vmem:[%s281_s25] sm:$0xff]   ;;  %v1241_v5 = vld [vmem:[%s281_s25 + $0x8] sm:$0xff]   ;;  %v1242_v6 = vld [vmem:[%s281_s25 + $0x10] sm:$0xff]   ;;  %vm578_vm15 = vcmp.eq.s32.totalorder %v570_v17, %v1585_v41  ;;  %s1096_s10 = sshll.u32 %s1823_s9, 3  ;;  %s949_s21 = scalar_lea.sflag [#allocation5], %s1823_s9 }
  0x1e   : > { %1165 = vmatprep.mubr.msk.bf16.mxu1 %vm350_vm0, %v1240_v4  ;;  %v1246_v7 = vld [vmem:[%s273_s7] sm:$0xff]   ;;  %v1247_v8 = vld [vmem:[%s273_s7 + $0x8] sm:$0xff]   ;;  %v1248_v9 = vld [vmem:[%s273_s7 + $0x10] sm:$0xff]   ;;  %s267_s11 = scalar_lea.vmem [#allocation6], %s1096_s10  ;;  %s260_s13 = scalar_lea.vmem [#allocation4], %s1096_s10 }
  0x1f   : > { %1166 = vmatmul.mubr.msk.bf16.vlgmr.msra.gmra.mrb[0].mxu1 %vm350_vm0, %v1241_v5  ;;  %1153 = vmatprep.mubr.msk.bf16.mxu0 %vm350_vm0, %v1246_v7  ;;  %v1244_v10 = vld [vmem:[%s281_s25 + $0x18] sm:$0xff]   ;;  %vm1580_vm9 = vmor %vm572_vm7, %vm579_vm2  ;;  %vm791_vm7 = vcmp.lt.s32.totalorder %v1547_v21, 16  ;;  %s980_s12 = sshll.u32 %s267_s11, 4  ;;  %s967_s14 = sshll.u32 %s260_s13, 4  ;;  %s1827_s12 = int_to_ptr.vmem [resolvable:$true] %s980_s12  ;;  %s1834_s14 = int_to_ptr.vmem [resolvable:$true] %s967_s14 }
  0x20   : > { %1169 = vmatprep.mubr.msk.bf16.mxu1 %vm350_vm0, %v1242_v6  ;;  %1154 = vmatmul.mubr.msk.bf16.vlgmr.msra.gmra.mrb[0].mxu0 %vm350_vm0, %v1247_v8  ;;  %v1249_v11 = vld [vmem:[%s273_s7 + $0x18] sm:$0xff]   ;;  %vm1594_vm13 = vmor %vm575_vm10, %vm579_vm2  ;;  %vm793_vm10 = vcmp.lt.s32.totalorder %v1568_v33, 16  ;;  %s1314_s10 = scalar_lea.vmem %s1834_s14, 128  ;;  %s1427_s16 = smov [#allocation4]  }
  0x21   : > { %1157 = vmatprep.mubr.msk.bf16.mxu0 %vm350_vm0, %v1248_v9  ;;  %vm1599_vm14 = vmor %vm576_vm11, %vm579_vm2  ;;  %p1315_p12 = scmp.ne.s32.totalorder %s1834_s14, %s1314_s10  ;;  %s1318_s17 = sshll.u32 %s1427_s16, 4  ;;  %s1319_s17 = int_to_ptr.vmem [resolvable:$false] %s1318_s17 }
  0x22   : > { %vm1612_vm1 = vmor %vm578_vm15, %vm579_vm2  ;;  %s1320_s0 = scalar_lea.vmem %s1319_s17, 256  ;;  %p1321_p1 = scmp.lt.s32.totalorder %s1834_s14, %s1319_s17 }
  0x23   : > { %p1316_p13 = pnand %p1315_p12, %p1499_p4  ;;  %p1322_p2 = scmp.lt.s32.totalorder %s1320_s0, %s1314_s10 }
  0x25   : > { %p1317_p0 = pneg %p1316_p13  ;;  %p1323_p3 = por %p1322_p2, %p1321_p1 }
  0x27   : > { %1170 = vmatmul.mubr.msk.bf16.gmra.mrb[4].mxu1 %vm350_vm0, %v1244_v10  ;;  %p1324_p5 = pnand %p1323_p3, %p1317_p0 }
  0x28   : > { %1158 = vmatmul.mubr.msk.bf16.gmra.mrb[4].mxu0 %vm350_vm0, %v1249_v11  ;;  %vm1605_vm0 = vmor %vm577_vm12, %vm579_vm2  ;;  %vm289_vm2 = vcmask 7168  }
  0xf2   : > { %v1167_v28 = vpop.f32.mrb[0].mxu1 }
  0xf3   : > { %v518_v31 = vpop.f32.mrb[1].mxu1  ;;  %v598_v32 = vsel %vm1553_vm4, -1e+30, %v1167_v28  ;;  %v1155_v40 = vpop.f32.mrb[0].mxu0 }
  0xf4   : > { %664 = vmax.xlane.f32.xlu1 %v598_v32  ;;  %v1168_v34 = vpop.f32.mrb[2].mxu1  ;;  %v596_v35 = vsel %vm1558_vm5, -1e+30, %v518_v31  ;;  %v397_v43 = vpop.f32.mrb[1].mxu0  ;;  %v1628_v1 = vsel %vm1553_vm4, -1e+30, %v1155_v40 }
  0xf5   : > { %660 = vmax.xlane.f32.xlu0 %v596_v35  ;;  %v521_v38 = vpop.f32.mrb[3].mxu1  ;;  %v599_v42 = vsel %vm1573_vm8, -1e+30, %v1168_v34  ;;  %v1156_v45 = vpop.f32.mrb[2].mxu0  ;;  %v588_v63 = vsel %vm1558_vm5, -1e+30, %v397_v43 }
  0xf6   : > { %v597_v44 = vsel %vm1580_vm9, -1e+30, %v521_v38  ;;  %v400_v47 = vpop.f32.mrb[3].mxu0  ;;  %v1632_v2 = vsel %vm1573_vm8, -1e+30, %v1156_v45  ;;  %vm789_vm4 = vcmp.lt.s32.totalorder %v1550_v22, 16 }
  0xf7   : > { %v589_v0 = vsel %vm1580_vm9, -1e+30, %v400_v47  ;;  %vm790_vm5 = vcmp.lt.s32.totalorder %v1542_v16, 16  ;;  %vm794_vm8 = vcmp.lt.s32.totalorder %v1577_v37, 16  ;;  %vm795_vm9 = vcmp.lt.s32.totalorder %v1585_v41, 16 }
  0xf8   : > { %666 = vmax.xlane.f32.xlu1 %v599_v42 }
  0xf9   : > { %662 = vmax.xlane.f32.xlu0 %v597_v44 }
  0xfa   : > { %v1171_v48 = vpop.f32.mrb[4].mxu1 }
  0xfb   : > { %v534_v50 = vpop.f32.mrb[5].mxu1  ;;  %v602_v57 = vsel %vm1605_vm0, -1e+30, %v1171_v48  ;;  %v1159_v58 = vpop.f32.mrb[4].mxu0 }
  0xfc   : > { %v1172_v52 = vpop.f32.mrb[6].mxu1  ;;  %v600_v53 = vsel %vm1594_vm13, -1e+30, %v534_v50  ;;  %v413_v59 = vpop.f32.mrb[5].mxu0  ;;  %v1651_v6 = vsel %vm1605_vm0, -1e+30, %v1159_v58 }
  0xfd   : > { %668 = vmax.xlane.f32.xlu0 %v600_v53  ;;  %v537_v54 = vpop.f32.mrb[7].mxu1  ;;  %v603_v60 = vsel %vm1612_vm1, -1e+30, %v1172_v52  ;;  %v1160_v61 = vpop.f32.mrb[6].mxu0  ;;  %v1641_v4 = vsel %vm1594_vm13, -1e+30, %v413_v59 }
  0xfe   : > { %v601_v56 = vsel %vm1599_vm14, -1e+30, %v537_v54  ;;  %v416_v62 = vpop.f32.mrb[7].mxu0  ;;  %v1636_v3 = vsel %vm1612_vm1, -1e+30, %v1160_v61 }
  0xff   : > { %670 = vmax.xlane.f32.xlu1 %v601_v56  ;;  %v1646_v5 = vsel %vm1599_vm14, -1e+30, %v416_v62 }
 0x101   : > { %672 = vmax.xlane.f32.xlu0 %v602_v57 }
 0x103   : > { %674 = vmax.xlane.f32.xlu1 %v603_v60 }
 0x105   : > { %604 = vmax.xlane.f32.xlu0 %v588_v63 }
 0x107   : > { %606 = vmax.xlane.f32.xlu1 %v589_v0 }
 0x109   : > { %608 = vmax.xlane.f32.xlu0 %v1628_v1 }
 0x10b   : > { %610 = vmax.xlane.f32.xlu1 %v1632_v2 }
 0x10d   : > { %612 = vmax.xlane.f32.xlu0 %v1641_v4 }
 0x10f   : > { %614 = vmax.xlane.f32.xlu1 %v1646_v5 }
 0x111   : > { %616 = vmax.xlane.f32.xlu0 %v1651_v6 }
 0x181   : > { %v665_v7 = vpop.xlane.xlu1 %664 }
 0x182   : > { %v1655_v8 = vsub.f32 %v598_v32, %v665_v7  ;;  %v661_v9 = vpop.xlane.xlu0 %660 }
 0x183   : > { %v1657_v10 = vsub.f32 %v596_v35, %v661_v9 }
 0x184   : > { %v688_v11 = vmul.f32 1.442695, %v1655_v8 }
 0x185   : > { %v684_v12 = vmul.f32 1.442695, %v1657_v10  ;;  %v667_v13 = vpop.xlane.xlu1 %666 }
 0x186   : > { %1250 = vpow2.f32 %v688_v11  ;;  %v1661_v14 = vsub.f32 %v599_v42, %v667_v13  ;;  %v663_v15 = vpop.xlane.xlu0 %662  ;;  %v1426_v11 = vmov 0.0  }
 0x187   : > { %1252 = vpow2.f32 %v684_v12  ;;  %v1663_v17 = vsub.f32 %v597_v44, %v663_v15  ;;  %291 = vst.msk [vmem:[#allocation2 + $0x8] sm:$0xff] %vm289_vm2, %v1426_v11  ;;  %299 = vst.msk [vmem:[#allocation3 + $0x8] sm:$0xff] %vm289_vm2, %v1426_v11 }
 0x188   : > { %v690_v20 = vmul.f32 1.442695, %v1661_v14  ;;  %290 = vst.msk [vmem:[#allocation2] sm:$0xff] %vm289_vm2, %v1426_v11  ;;  %292 = vst.msk [vmem:[#allocation2 + $0x10] sm:$0xff] %vm289_vm2, %v1426_v11 }
 0x189   : > { %v686_v18 = vmul.f32 1.442695, %v1663_v17  ;;  %293 = vst.msk [vmem:[#allocation2 + $0x18] sm:$0xff] %vm289_vm2, %v1426_v11  ;;  %294 = vst.msk [vmem:[#allocation2 + $0x20] sm:$0xff] %vm289_vm2, %v1426_v11 }
 0x18a   : > { %v669_v23 = vpop.xlane.xlu0 %668  ;;  %295 = vst.msk [vmem:[#allocation2 + $0x28] sm:$0xff] %vm289_vm2, %v1426_v11  ;;  %296 = vst.msk [vmem:[#allocation2 + $0x30] sm:$0xff] %vm289_vm2, %v1426_v11 }
 0x18b   : > { %1254 = vpow2.f32 %v686_v18  ;;  %v1667_v24 = vsub.f32 %v600_v53, %v669_v23  ;;  %297 = vst.msk [vmem:[#allocation2 + $0x38] sm:$0xff] %vm289_vm2, %v1426_v11  ;;  %298 = vst.msk [vmem:[#allocation3] sm:$0xff] %vm289_vm2, %v1426_v11 }
 0x18c   : > { %v671_v25 = vpop.xlane.xlu1 %670  ;;  %1256 = vpow2.f32 %v690_v20  ;;  %300 = vst.msk [vmem:[#allocation3 + $0x10] sm:$0xff] %vm289_vm2, %v1426_v11  ;;  %301 = vst.msk [vmem:[#allocation3 + $0x18] sm:$0xff] %vm289_vm2, %v1426_v11 }
 0x18d   : > { %v692_v26 = vmul.f32 1.442695, %v1667_v24  ;;  %v1670_v27 = vsub.f32 %v601_v56, %v671_v25  ;;  %302 = vst.msk [vmem:[#allocation3 + $0x20] sm:$0xff] %vm289_vm2, %v1426_v11  ;;  %303 = vst.msk [vmem:[#allocation3 + $0x28] sm:$0xff] %vm289_vm2, %v1426_v11 }
 0x18e   : > { %v673_v28 = vpop.xlane.xlu0 %672  ;;  %304 = vst.msk [vmem:[#allocation3 + $0x30] sm:$0xff] %vm289_vm2, %v1426_v11  ;;  %305 = vst.msk [vmem:[#allocation3 + $0x38] sm:$0xff] %vm289_vm2, %v1426_v11  ;;  %v854_v22 = vld [vmem:[#allocation3 + $0x8] sm:$0xff] }
 0x18f   : > { %1258 = vpow2.f32 %v692_v26  ;;  %v694_v30 = vmul.f32 1.442695, %v1670_v27  ;;  %v1673_v31 = vsub.f32 %v602_v57, %v673_v28 }
 0x190   : > { %v1251_v32 = vpop.eup %1250  ;;  %v675_v34 = vpop.xlane.xlu1 %674 }
 0x191   : > { %v1253_v35 = vpop.eup %1252  ;;  %v696_v36 = vmul.f32 1.442695, %v1673_v31  ;;  %v1676_v38 = vsub.f32 %v603_v60, %v675_v34  ;;  %704 = vadd.xlane.f32.xlu1 %v1251_v32  ;;  %1260 = vpow2.f32 %v694_v30 }
 0x192   : > { %v605_v39 = vpop.xlane.xlu0 %604  ;;  %700 = vadd.xlane.f32.xlu0 %v1253_v35 }
 0x193   : > { %1262 = vpow2.f32 %v696_v36  ;;  %v698_v40 = vmul.f32 1.442695, %v1676_v38  ;;  %v620_v42 = vsub.f32 %v588_v63, %v605_v39 }
 0x194   : > { %v607_v43 = vpop.xlane.xlu1 %606 }
 0x195   : > { %v1255_v44 = vpop.eup %1254  ;;  %v628_v45 = vmul.f32 1.442695, %v620_v42  ;;  %v621_v46 = vsub.f32 %v589_v0, %v607_v43  ;;  %1264 = vpow2.f32 %v698_v40 }
 0x196   : > { %v609_v47 = vpop.xlane.xlu0 %608  ;;  %618 = vmax.xlane.f32.xlu0 %v1636_v3  ;;  %702 = vadd.xlane.f32.xlu1 %v1255_v44  ;;  %v1257_v50 = vpop.eup %1256 }
 0x197   : > { %1266 = vpow2.f32 %v628_v45  ;;  %v630_v48 = vmul.f32 1.442695, %v621_v46  ;;  %v622_v49 = vsub.f32 %v1628_v1, %v609_v47 }
 0x198   : > { %v611_v51 = vpop.xlane.xlu1 %610 }
 0x199   : > { %v1259_v52 = vpop.eup %1258  ;;  %v632_v53 = vmul.f32 1.442695, %v622_v49  ;;  %v623_v54 = vsub.f32 %v1632_v2, %v611_v51  ;;  %1268 = vpow2.f32 %v630_v48 }
 0x19a   : > { %v613_v55 = vpop.xlane.xlu0 %612  ;;  %708 = vadd.xlane.f32.xlu0 %v1259_v52  ;;  %706 = vadd.xlane.f32.xlu1 %v1257_v50 }
 0x19b   : > { %1270 = vpow2.f32 %v632_v53  ;;  %v634_v56 = vmul.f32 1.442695, %v623_v54  ;;  %v624_v57 = vsub.f32 %v1641_v4, %v613_v55  ;;  %v1261_v58 = vpop.eup %1260 }
 0x19c   : > { %v615_v12 = vpop.xlane.xlu1 %614 }
 0x19d   : > { %v1263_v59 = vpop.eup %1262  ;;  %v636_v60 = vmul.f32 1.442695, %v624_v57  ;;  %1272 = vpow2.f32 %v634_v56  ;;  %v625_v18 = vsub.f32 %v1646_v5, %v615_v12 }
 0x19e   : > { %v617_v61 = vpop.xlane.xlu0 %616  ;;  %712 = vadd.xlane.f32.xlu0 %v1263_v59  ;;  %710 = vadd.xlane.f32.xlu1 %v1261_v58 }
 0x19f   : > { %1274 = vpow2.f32 %v636_v60  ;;  %v626_v62 = vsub.f32 %v1651_v6, %v617_v61  ;;  %v1265_v63 = vpop.eup %1264  ;;  %v638_v28 = vmul.f32 1.442695, %v625_v18 }
 0x1a1   : > { %v1684_v0 = vpop.eup %1266  ;;  %v640_v1 = vmul.f32 1.442695, %v626_v62 }
 0x1a2   : > { %644 = vadd.xlane.f32.xlu0 %v1684_v0  ;;  %714 = vadd.xlane.f32.xlu1 %v1265_v63 }
 0x1a3   : > { %1276 = vpow2.f32 %v640_v1  ;;  %v1687_v2 = vpop.eup %1268 }
 0x1a5   : > { %v1689_v4 = vpop.eup %1270 }
 0x1a6   : > { %648 = vadd.xlane.f32.xlu0 %v1689_v4  ;;  %646 = vadd.xlane.f32.xlu1 %v1687_v2 }
 0x1a7   : > { %v1693_v7 = vpop.eup %1272 }
 0x1a9   : > { %v1695_v9 = vpop.eup %1274 }
 0x1aa   : > { %652 = vadd.xlane.f32.xlu0 %v1695_v9  ;;  %650 = vadd.xlane.f32.xlu1 %v1693_v7 }
 0x1ad   : > { %v1699_v6 = vpop.eup %1276 }
 0x1ae   : > { %656 = vadd.xlane.f32.xlu0 %v1699_v6 }
 0x21e   : > { %v705_v13 = vpop.xlane.xlu1 %704 }
 0x21f   : > { %v701_v15 = vpop.xlane.xlu0 %700  ;;  %1278 = vlog2.f32 %v705_v13 }
 0x220   : > { %1280 = vlog2.f32 %v701_v15 }
 0x223   : > { %v619_v20 = vpop.xlane.xlu0 %618  ;;  %v703_v23 = vpop.xlane.xlu1 %702 }
 0x224   : > { %v627_v25 = vsub.f32 %v1636_v3, %v619_v20  ;;  %1282 = vlog2.f32 %v703_v23 }
 0x226   : > { %v642_v26 = vmul.f32 1.442695, %v627_v25  ;;  %v1124_v25 = vsel %vm789_vm4, 1.0, %v1426_v11 }
 0x227   : > { %v709_v30 = vpop.xlane.xlu0 %708  ;;  %v707_v32 = vpop.xlane.xlu1 %706 }
 0x228   : > { %1284 = vpow2.f32 %v642_v26 }
 0x229   : > { %1286 = vlog2.f32 %v709_v30  ;;  %v1279_v36 = vpop.eup %1278  ;;  %v855_v30 = vld [vmem:[#allocation3 + $0x10] sm:$0xff] }
 0x22a   : > { %1288 = vlog2.f32 %v707_v32  ;;  %v1281_v39 = vpop.eup %1280  ;;  %v721_v40 = vmul.f32 0.6931472, %v1279_v36 }
 0x22b   : > { %1290 = vpow2.f32 %v638_v28  ;;  %v713_v34 = vpop.xlane.xlu0 %712  ;;  %v711_v35 = vpop.xlane.xlu1 %710  ;;  %v717_v44 = vmul.f32 0.6931472, %v1281_v39  ;;  %v1127_v39 = vsel %vm792_vm6, 1.0, %v1426_v11 }
 0x22c   : > { %1292 = vlog2.f32 %v713_v34  ;;  %v734_v51 = vsub.f32 %v1655_v8, %v721_v40  ;;  %v1772_v40 = vsel %vm791_vm7, 1.0, %v1426_v11 }
 0x22d   : > { %1294 = vlog2.f32 %v711_v35 }
 0x22e   : > { %v1283_v5 = vpop.eup %1282  ;;  %v750_v61 = vmul.f32 %v1689_v4, %v734_v51  ;;  %v859_v51 = vld [vmem:[#allocation3 + $0x30] sm:$0xff] }
 0x22f   : > { %v719_v42 = vmul.f32 0.6931472, %v1283_v5  ;;  %v645_v43 = vpop.xlane.xlu0 %644  ;;  %v715_v3 = vpop.xlane.xlu1 %714 }
 0x230   : > { %1296 = vrcp.f32 %v645_v43 }
 0x231   : > { %1298 = vlog2.f32 %v715_v3  ;;  %v733_v45 = vsub.f32 %v1663_v17, %v719_v42  ;;  %v732_v17 = vsub.f32 %v1657_v10, %v717_v44  ;;  %v856_v44 = vld [vmem:[#allocation3 + $0x18] sm:$0xff] }
 0x232   : > { %v1737_v46 = vpop.eup %1284 }
 0x233   : > { %v1287_v47 = vpop.eup %1286  ;;  %v649_v48 = vpop.xlane.xlu0 %648  ;;  %658 = vadd.xlane.f32.xlu1 %v1737_v46  ;;  %v749_v50 = vmul.f32 %v1687_v2, %v733_v45  ;;  %v748_v63 = vmul.f32 %v1684_v0, %v732_v17  ;;  %v1752_v2 = vsel %vm788_vm3, 1.0, %v1426_v11  ;;  %v829_v17 = vld [vmem:[#allocation2 + $0x8] sm:$0xff] }
 0x234   : > { %v647_v49 = vpop.xlane.xlu1 %646  ;;  %v1289_v52 = vpop.eup %1288  ;;  %v725_v53 = vmul.f32 0.6931472, %v1287_v47  ;;  %1300 = vrcp.f32 %v649_v48 }
 0x235   : > { %v1291_v54 = vpop.eup %1290  ;;  %v723_v55 = vmul.f32 0.6931472, %v1289_v52  ;;  %1302 = vrcp.f32 %v647_v49  ;;  %758 = vadd.xlane.f32.xlu0 %v749_v50 }
 0x236   : > { %v1293_v56 = vpop.eup %1292  ;;  %v736_v62 = vsub.f32 %v1667_v24, %v725_v53 }
 0x237   : > { %v1295_v57 = vpop.eup %1294  ;;  %v729_v58 = vmul.f32 0.6931472, %v1293_v56  ;;  %v653_v59 = vpop.xlane.xlu0 %652  ;;  %654 = vadd.xlane.f32.xlu1 %v1291_v54  ;;  %v735_v10 = vsub.f32 %v1661_v14, %v723_v55  ;;  %v853_v14 = vld [vmem:[#allocation3] sm:$0xff] }
 0x238   : > { %v651_v60 = vpop.xlane.xlu1 %650  ;;  %1304 = vrcp.f32 %v653_v59  ;;  %v727_v8 = vmul.f32 0.6931472, %v1295_v57  ;;  %v752_v19 = vmul.f32 %v1695_v9, %v736_v62  ;;  %v1125_v9 = vsel %vm790_vm5, 1.0, %v1426_v11 }
 0x239   : > { %1306 = vrcp.f32 %v651_v60  ;;  %760 = vadd.xlane.f32.xlu0 %v750_v61  ;;  %v738_v13 = vsub.f32 %v1673_v31, %v729_v58  ;;  %v751_v15 = vmul.f32 %v1693_v7, %v735_v10  ;;  %v830_v61 = vld [vmem:[#allocation2 + $0x10] sm:$0xff]  ;;  %v828_v10 = vld [vmem:[#allocation2] sm:$0xff] }
 0x23a   : > { %v1748_v1 = vpop.eup %1296  ;;  %v737_v18 = vsub.f32 %v1670_v27, %v727_v8 }
 0x23b   : > { %v1299_v4 = vpop.eup %1298  ;;  %v780_v24 = vmul.f32 %v1748_v1, %v645_v43  ;;  %v657_v12 = vpop.xlane.xlu0 %656  ;;  %756 = vadd.xlane.f32.xlu1 %v748_v63  ;;  %v754_v16 = vmul.f32 %v1699_v6, %v738_v13 }
 0x23c   : > { %1308 = vrcp.f32 %v657_v12  ;;  %v731_v0 = vmul.f32 0.6931472, %v1299_v4  ;;  %v753_v27 = vmul.f32 %v1291_v54, %v737_v18  ;;  %v832_v18 = vld [vmem:[#allocation2 + $0x20] sm:$0xff] }
 0x23d   : > { %764 = vadd.xlane.f32.xlu0 %v752_v19  ;;  %v820_v20 = vmul.f32 %v1752_v2, %v780_v24 }
 0x23e   : > { %v1301_v23 = vpop.eup %1300  ;;  %v739_v32 = vsub.f32 %v1676_v38, %v731_v0  ;;  %v857_v38 = vld [vmem:[#allocation3 + $0x20] sm:$0xff] }
 0x23f   : > { %v1303_v31 = vpop.eup %1302  ;;  %v782_v26 = vmul.f32 %v1301_v23, %v649_v48  ;;  %762 = vadd.xlane.f32.xlu1 %v751_v15  ;;  %v861_v28 = vadd.f32 %v853_v14, %v820_v20  ;;  %v1780_v48 = vsel %vm794_vm8, 1.0, %v1426_v11  ;;  %v1130_v14 = vsel %vm795_vm9, 1.0, %v1426_v11 }
 0x240   : > { %v781_v7 = vmul.f32 %v1303_v31, %v647_v49  ;;  %v755_v43 = vmul.f32 %v1737_v46, %v739_v32  ;;  %v1128_v32 = vsel %vm793_vm10, 1.0, %v1426_v11 }
 0x241   : > { %768 = vadd.xlane.f32.xlu0 %v754_v16  ;;  %v822_v34 = vmul.f32 %v1125_v9, %v782_v26  ;;  %869 = vst.msk [vmem:[#allocation3] sm:$0xff] %vm289_vm2, %v861_v28 }
 0x242   : > { %v1305_v35 = vpop.eup %1304  ;;  %v821_v36 = vmul.f32 %v1124_v25, %v781_v7 }
 0x243   : > { %v1307_v6 = vpop.eup %1306  ;;  %v784_v5 = vmul.f32 %v1305_v35, %v653_v59  ;;  %766 = vadd.xlane.f32.xlu1 %v753_v27  ;;  %v863_v29 = vadd.f32 %v855_v30, %v822_v34  ;;  %v834_v34 = vld [vmem:[#allocation2 + $0x30] sm:$0xff] }
 0x244   : > { %v783_v21 = vmul.f32 %v1307_v6, %v651_v60  ;;  %v862_v42 = vadd.f32 %v854_v22, %v821_v36 }
 0x245   : > { %871 = vst.msk [vmem:[#allocation3 + $0x10] sm:$0xff] %vm289_vm2, %v863_v29  ;;  %v824_v3 = vmul.f32 %v1127_v39, %v784_v5  ;;  %v858_v29 = vld [vmem:[#allocation3 + $0x28] sm:$0xff] }
 0x246   : > { %v1309_v45 = vpop.eup %1308  ;;  %870 = vst.msk [vmem:[#allocation3 + $0x8] sm:$0xff] %vm289_vm2, %v862_v42  ;;  %v823_v47 = vmul.f32 %v1772_v40, %v783_v21 }
 0x247   : > { %v786_v49 = vmul.f32 %v1309_v45, %v657_v12  ;;  %770 = vadd.xlane.f32.xlu1 %v755_v43  ;;  %v865_v37 = vadd.f32 %v857_v38, %v824_v3  ;;  %v833_v43 = vld [vmem:[#allocation2 + $0x28] sm:$0xff] }
 0x248   : > { %v864_v50 = vadd.f32 %v856_v44, %v823_v47 }
 0x249   : > { %873 = vst.msk [vmem:[#allocation3 + $0x20] sm:$0xff] %vm289_vm2, %v865_v37  ;;  %v826_v46 = vmul.f32 %v1780_v48, %v786_v49 }
 0x24a   : > { %872 = vst.msk [vmem:[#allocation3 + $0x18] sm:$0xff] %vm289_vm2, %v864_v50 }
 0x24b   : > { %v867_v52 = vadd.f32 %v859_v51, %v826_v46  ;;  %v835_v51 = vld [vmem:[#allocation2 + $0x38] sm:$0xff] }
 0x24c   : > { %v916_v42 = vld [vmem:[#allocation3 + $0x10] sm:$0xff] }
 0x24d   : > { %875 = vst.msk [vmem:[#allocation3 + $0x30] sm:$0xff] %vm289_vm2, %v867_v52  ;;  %v915_v0 = vld [vmem:[#allocation3 + $0x8] sm:$0xff]  ;;  %v925_v47 = vsel %vm289_vm2, %v916_v42, 0.0 }
 0x251   : > { %v917_v3 = vld [vmem:[#allocation3 + $0x18] sm:$0xff] }
 0x252   : > { %v927_v46 = vsel %vm289_vm2, %v917_v3, 0.0 }
 0x2c0   : > { %v659_v53 = vpop.xlane.xlu1 %658 }
 0x2c1   : > { %1310 = vrcp.f32 %v659_v53 }
 0x2c2   : > { %v759_v54 = vpop.xlane.xlu0 %758 }
 0x2c3   : > { %v773_v55 = vmul.f32 %v1303_v31, %v759_v54  ;;  %v831_v31 = vld [vmem:[#allocation2 + $0x18] sm:$0xff] }
 0x2c4   : > { %v655_v56 = vpop.xlane.xlu1 %654 }
 0x2c5   : > { %v813_v57 = vmul.f32 %v1124_v25, %v773_v55  ;;  %1312 = vrcp.f32 %v655_v56  ;;  %v860_v25 = vld [vmem:[#allocation3 + $0x38] sm:$0xff] }
 0x2c6   : > { %v761_v58 = vpop.xlane.xlu0 %760 }
 0x2c7   : > { %v837_v59 = vadd.f32 %v829_v17, %v813_v57  ;;  %v774_v60 = vmul.f32 %v1301_v23, %v761_v58  ;;  %v918_v58 = vld [vmem:[#allocation3 + $0x20] sm:$0xff] }
 0x2c8   : > { %v757_v62 = vpop.xlane.xlu1 %756 }
 0x2c9   : > { %846 = vst.msk [vmem:[#allocation2 + $0x8] sm:$0xff] %vm289_vm2, %v837_v59  ;;  %v814_v8 = vmul.f32 %v1125_v9, %v774_v60  ;;  %v772_v63 = vmul.f32 %v1748_v1, %v757_v62  ;;  %v914_v9 = vld [vmem:[#allocation3] sm:$0xff] }
 0x2ca   : > { %v765_v4 = vpop.xlane.xlu0 %764 }
 0x2cb   : > { %v1311_v24 = vpop.eup %1310  ;;  %v838_v12 = vadd.f32 %v830_v61, %v814_v8  ;;  %v812_v19 = vmul.f32 %v1752_v2, %v772_v63  ;;  %v776_v13 = vmul.f32 %v1305_v35, %v765_v4  ;;  %v923_v2 = vsel %vm289_vm2, %v915_v0, 0.0 }
 0x2cc   : > { %v787_v15 = vmul.f32 %v1311_v24, %v659_v53  ;;  %v763_v20 = vpop.xlane.xlu1 %762 }
 0x2cd   : > { %847 = vst.msk [vmem:[#allocation2 + $0x10] sm:$0xff] %vm289_vm2, %v838_v12  ;;  %v836_v41 = vadd.f32 %v828_v10, %v812_v19  ;;  %v816_v23 = vmul.f32 %v1127_v39, %v776_v13  ;;  %v775_v1 = vmul.f32 %v1307_v6, %v763_v20  ;;  %v922_v39 = vsel %vm289_vm2, %v914_v9, 0.0  ;;  %v920_v12 = vld [vmem:[#allocation3 + $0x30] sm:$0xff] }
 0x2ce   : > { %v769_v26 = vpop.xlane.xlu0 %768  ;;  %v827_v16 = vmul.f32 %v1130_v14, %v787_v15  ;;  %v929_v10 = vsel %vm289_vm2, %v918_v58, 0.0 }
 0x2cf   : > { %v1313_v28 = vpop.eup %1312  ;;  %845 = vst.msk [vmem:[#allocation2] sm:$0xff] %vm289_vm2, %v836_v41  ;;  %v840_v7 = vadd.f32 %v832_v18, %v816_v23  ;;  %v815_v30 = vmul.f32 %v1772_v40, %v775_v1  ;;  %v778_v27 = vmul.f32 %v1309_v45, %v769_v26  ;;  %v924_v40 = vadd.f32 %v923_v2, %v922_v39 }
 0x2d0   : > { %v785_v22 = vmul.f32 %v1313_v28, %v655_v56  ;;  %v767_v35 = vpop.xlane.xlu1 %766  ;;  %v868_v36 = vadd.f32 %v860_v25, %v827_v16  ;;  %v881_v49 = vld [vmem:[#allocation2 + $0x8] sm:$0xff]  ;;  %v933_v1 = vsel %vm289_vm2, %v920_v12, 0.0 }
 0x2d1   : > { %849 = vst.msk [vmem:[#allocation2 + $0x20] sm:$0xff] %vm289_vm2, %v840_v7  ;;  %v839_v6 = vadd.f32 %v831_v31, %v815_v30  ;;  %v818_v5 = vmul.f32 %v1780_v48, %v778_v27  ;;  %v777_v21 = vmul.f32 %v1313_v28, %v767_v35  ;;  %v926_v50 = vadd.f32 %v925_v47, %v924_v40 }
 0x2d2   : > { %v825_v38 = vmul.f32 %v1128_v32, %v785_v22  ;;  %876 = vst.msk [vmem:[#allocation3 + $0x38] sm:$0xff] %vm289_vm2, %v868_v36  ;;  %v889_v17 = vsel %vm289_vm2, %v881_v49, 0.0 }
 0x2d3   : > { %848 = vst.msk [vmem:[#allocation2 + $0x18] sm:$0xff] %vm289_vm2, %v839_v6  ;;  %v842_v33 = vadd.f32 %v834_v34, %v818_v5  ;;  %v817_v11 = vmul.f32 %v1128_v32, %v777_v21  ;;  %v928_v59 = vadd.f32 %v927_v46, %v926_v50 }
 0x2d4   : > { %v866_v44 = vadd.f32 %v858_v29, %v825_v38  ;;  %v771_v45 = vpop.xlane.xlu1 %770  ;;  %v882_v53 = vld [vmem:[#allocation2 + $0x10] sm:$0xff] }
 0x2d5   : > { %851 = vst.msk [vmem:[#allocation2 + $0x30] sm:$0xff] %vm289_vm2, %v842_v33  ;;  %v841_v48 = vadd.f32 %v833_v43, %v817_v11  ;;  %v779_v37 = vmul.f32 %v1311_v24, %v771_v45  ;;  %v891_v60 = vsel %vm289_vm2, %v882_v53, 0.0  ;;  %v930_v19 = vadd.f32 %v929_v10, %v928_v59 }
 0x2d6   : > { %874 = vst.msk [vmem:[#allocation3 + $0x28] sm:$0xff] %vm289_vm2, %v866_v44  ;;  %v880_v52 = vld [vmem:[#allocation2] sm:$0xff] }
 0x2d7   : > { %850 = vst.msk [vmem:[#allocation2 + $0x28] sm:$0xff] %vm289_vm2, %v841_v48  ;;  %v819_v54 = vmul.f32 %v1130_v14, %v779_v37  ;;  %v888_v55 = vsel %vm289_vm2, %v880_v52, 0.0 }
 0x2d8   : > { %v890_v56 = vadd.f32 %v889_v17, %v888_v55  ;;  %v884_v62 = vld [vmem:[#allocation2 + $0x20] sm:$0xff] }
 0x2d9   : > { %v843_v57 = vadd.f32 %v835_v51, %v819_v54  ;;  %v895_v13 = vsel %vm289_vm2, %v884_v62, 0.0  ;;  %v921_v20 = vld [vmem:[#allocation3 + $0x38] sm:$0xff] }
 0x2da   : > { %v883_v61 = vld [vmem:[#allocation2 + $0x18] sm:$0xff]  ;;  %v892_v8 = vadd.f32 %v891_v60, %v890_v56  ;;  %v935_v26 = vsel %vm289_vm2, %v921_v20, 0.0 }
 0x2db   : > { %852 = vst.msk [vmem:[#allocation2 + $0x38] sm:$0xff] %vm289_vm2, %v843_v57  ;;  %v893_v63 = vsel %vm289_vm2, %v883_v61, 0.0 }
 0x2dc   : > { %v894_v4 = vadd.f32 %v893_v63, %v892_v8  ;;  %v886_v15 = vld [vmem:[#allocation2 + $0x30] sm:$0xff] }
 0x2dd   : > { %v919_v24 = vld [vmem:[#allocation3 + $0x28] sm:$0xff]  ;;  %v899_v31 = vsel %vm289_vm2, %v886_v15, 0.0 }
 0x2de   : > { %v931_v14 = vsel %vm289_vm2, %v919_v24, 0.0  ;;  %v885_v0 = vld [vmem:[#allocation2 + $0x28] sm:$0xff]  ;;  %v896_v18 = vadd.f32 %v895_v13, %v894_v4 }
 0x2df   : > { %v932_v41 = vadd.f32 %v931_v14, %v930_v19  ;;  %v897_v23 = vsel %vm289_vm2, %v885_v0, 0.0 }
 0x2e0   : > { %v898_v25 = vadd.f32 %v897_v23, %v896_v18 }
 0x2e1   : > { %v934_v9 = vadd.f32 %v933_v1, %v932_v41 }
 0x2e2   : > { %v887_v16 = vld [vmem:[#allocation2 + $0x38] sm:$0xff]  ;;  %v900_v2 = vadd.f32 %v899_v31, %v898_v25 }
 0x2e3   : > { %v936_v28 = vadd.f32 %v935_v26, %v934_v9  ;;  %v901_v7 = vsel %vm289_vm2, %v887_v16, 0.0 }
 0x2e4   : > { %v902_v30 = vadd.f32 %v901_v7, %v900_v2 }
 0x2e5   : > { %937 = vadd.xlane.f32.xlu1 %v936_v28 }
 0x2e6   : > { %903 = vadd.xlane.f32.xlu0 %v902_v30 }
 0x372   : > { %v938_v27 = vpop.xlane.xlu1 %937 }
 0x373   : > { %v939_v32 = vrot.slane %v938_v27, 4  ;;  %v904_v22 = vpop.xlane.xlu0 %903 }
 0x374   : > { %v905_v34 = vrot.slane %v904_v22, 4 }
 0x375   : > { %v940_v35 = vadd.f32 %v939_v32, %v938_v27 }
 0x376   : > { %v906_v36 = vadd.f32 %v905_v34, %v904_v22 }
 0x377   : > { %v941_v39 = vrot.slane %v940_v35, 2 }
 0x378   : > { %v907_v6 = vrot.slane %v906_v36, 2 }
 0x379   : > { %v942_v5 = vadd.f32 %v941_v39, %v940_v35 }
 0x37a   : > { %v908_v29 = vadd.f32 %v907_v6, %v906_v36 }
 0x37b   : > { %v943_v21 = vrot.slane %v942_v5, 1 }
 0x37c   : > { %v909_v42 = vrot.slane %v908_v29, 1 }
 0x37d   : > { %v944_v40 = vadd.f32 %v943_v21, %v942_v5 }
 0x37e   : > { %v910_v38 = vadd.f32 %v909_v42, %v908_v29 }
 0x380   : > { %1173 = vpush %v910_v38 }
 0x381   : > { %1175 = vpush %v944_v40 }
 0x3b1   : > { %s1174_s25 = spop %1173 }
 0x3b2   : > { %v912_v43 = vstv %s1174_s25  ;;  %s1176_s27 = spop %1175 }
 0x3b3   : > { %913 = vst [vmem:[%s260_s13] sm:$0xff] %v912_v43  ;;  %v946_v33 = vstv %s1176_s27 }
 0x3b4   : > { %947 = vst [vmem:[%s267_s11] sm:$0xff] %v946_v33 }
 0x3b5   : > { %1327 = shalt.err (!%p1324_p5)
}
 0x3b6   : > { %s1328_s11 = scalar_lea.hbm %s1832_s24, 128  ;;  %s1332_s25 = scalar_lea.hbm %s1911_s4, 256 }
 0x3b7   : > { %p1329_p6 = scmp.ne.s32.totalorder %s1832_s24, %s1328_s11  ;;  %p1333_p10 = scmp.lt.u32.totalorder %s1832_s24, %s1911_s4 }
 0x3b8   : > { %p1334_p11 = scmp.lt.u32.totalorder %s1332_s25, %s1328_s11  ;;  %p1336_p13 = scmp.lt.u32.totalorder %s1328_s11, %s1832_s24 }
 0x3b9   : > { %p1330_p7 = pnand %p1329_p6, %p1499_p4 }
 0x3ba   : > { %p1335_p12 = por %p1334_p11, %p1333_p10 }
 0x3bb   : > { %p1331_p9 = pneg %p1330_p7 }
 0x3bc   : > { %p1337_p0 = por %p1336_p13, %p1335_p12 }
 0x3be   : > { %p1338_p1 = pnand %p1337_p0, %p1331_p9 }
 0x3c0   : > { %1341 = shalt.err (!%p1338_p1)
}
 0x3c1   : > { %1177 = dma.vmem_to_hbm [thread:$0]  (%p1499_p4), %s1834_s14, 128, %s1832_s24, %s949_s21  }
 0x3c2   : > { %s954_s0 = scalar_lea.sflag [#allocation7], %s1823_s9  ;;  %s1342_s7 = scalar_lea.vmem %s1827_s12, 128 }
 0x3c3   : > { %p1343_p2 = scmp.ne.s32.totalorder %s1827_s12, %s1342_s7  ;;  %s1428_s10 = smov [#allocation6]  }
 0x3c4   : > { %s1346_s16 = sshll.u32 %s1428_s10, 4  ;;  %s1347_s16 = int_to_ptr.vmem [resolvable:$false] %s1346_s16 }
 0x3c5   : > { %p1344_p3 = pnand %p1343_p2, %p1499_p4  ;;  %s1348_s17 = scalar_lea.vmem %s1347_s16, 256 }
 0x3c6   : > { %p1349_p6 = scmp.lt.s32.totalorder %s1827_s12, %s1347_s16  ;;  %p1350_p7 = scmp.lt.s32.totalorder %s1348_s17, %s1342_s7 }
 0x3c7   : > { %p1345_p5 = pneg %p1344_p3 }
 0x3c8   : > { %p1351_p9 = por %p1350_p7, %p1349_p6 }
 0x3ca   : > { %p1352_p10 = pnand %p1351_p9, %p1345_p5 }
 0x3cc   : > { %1355 = shalt.err (!%p1352_p10)
}
 0x3cd   : > { %s1356_s9 = scalar_lea.hbm %s1839_s8, 128  ;;  %s1360_s21 = scalar_lea.hbm %s1912_s5, 256 }
 0x3ce   : > { %p1357_p11 = scmp.ne.s32.totalorder %s1839_s8, %s1356_s9  ;;  %p1361_p0 = scmp.lt.u32.totalorder %s1839_s8, %s1912_s5 }
 0x3cf   : > { %p1362_p1 = scmp.lt.u32.totalorder %s1360_s21, %s1356_s9  ;;  %p1364_p3 = scmp.lt.u32.totalorder %s1356_s9, %s1839_s8 }
 0x3d0   : > { %p1358_p12 = pnand %p1357_p11, %p1499_p4 }
 0x3d1   : > { %p1363_p2 = por %p1362_p1, %p1361_p0 }
 0x3d2   : > { %p1359_p13 = pneg %p1358_p12 }
 0x3d3   : > { %p1365_p5 = por %p1364_p3, %p1363_p2 }
 0x3d5   : > { %p1366_p6 = pnand %p1365_p5, %p1359_p13 }
 0x3d7   : > { %1369 = shalt.err (!%p1366_p6)
}
 0x3d8   : > { %1178 = dma.vmem_to_hbm [thread:$0]  (%p1499_p4), %s1827_s12, 128, %s1839_s8, %s954_s0  }
 0x3d9 PF: > { %p1188_p7 = scmp.ge.s32.totalorder %s1424_s23, 2  ;;  %s992_s15 = sand.u32 1, %s1404_s18  }
 0x3da   : > { %s993_s25 = scalar_lea.sflag [#allocation5], %s992_s15 }
 0x3db   : > { %p1182_p9 = pnand %p1188_p7, %p1506_p8 }
 0x3dd   : > { %1395 = dma.done.wait (!%p1182_p9), %s993_s25, 128  }
 0x3de   : > { %1397 = vsyncadd (!%p1182_p9), %s993_s25, 4294967168  ;;  %s1002_s27 = scalar_lea.sflag [#allocation7], %s992_s15 }
 0x3df   : > { %1399 = dma.done.wait (!%p1182_p9), %s1002_s27, 128  }
 0x3e0   : > { %1401 = vsyncadd (!%p1182_p9), %s1002_s27, 4294967168  ;;  %s22_s23 = sadd.s32 1, %s1424_s23   ;;  %s1933_s18 = smov %s1408_s19 }
 0x3e1   : > { %p19_p10 = scmp.ge.s32.totalorder %s22_s23, 4   ;;  %s1934_s19 = smov %s1412_s20 }
 0x3e2   : > { %s1935_s20 = smov %s1512_s6  ;;  %s1936_s21 = smov %s1420_s22 }
 0x3e3   : > { %s1937_s22 = smov %s1939_s26  ;;  %21 = sbr.rel (!%p19_p10) target bundleno = 8 (0x8), region = 99 }
 0x3ea   :  { %1007 = vsyncpa [#allocation5], 1 }
 0x3eb   :  { %1009 = vsyncpa [#allocation5 + $0x1], 1 }
 0x3ec   :  { %1010 = vsyncpa [#allocation7], 1 }
 0x3ed   :  { %1012 = vsyncpa [#allocation7 + $0x1], 1 }

</bundles_post_ra>
